<compile_context>
chip_gen: v5e
topology: v5e:2x2
jax: 0.10.0
libtpu: 0.0.40
codegen_flags: <defaults>
</compile_context>

<pallas_src>
import functools

import jax
import jax.numpy as jnp
from jax import lax
from jax.experimental import pallas as pl
from jax.experimental.pallas import tpu as pltpu


def _gelu_exact(x):
    # PyTorch nn.GELU() default = exact erf GELU (kept exact for parity with reference;
    # jax.nn.gelu(approximate=True) would move this to the EUP slot if parity is relaxed).
    return 0.5 * x * (1.0 + lax.erf(x * (2.0 ** -0.5)))


def _layernorm(x, w, b, eps=1e-5):
    # PyTorch LayerNorm: biased variance over last dim.
    mean = jnp.mean(x, axis=-1, keepdims=True)
    var = jnp.mean((x - mean) ** 2, axis=-1, keepdims=True)
    return (x - mean) * lax.rsqrt(var + eps) * w + b


def transformer_kernel(heads, dim_head,
                       x_ref, pvec_ref, b1_ref, wqkv_ref, wo_ref, w1_ref, w2_ref,
                       out_ref, xc_ref):
    l = pl.program_id(1)                    # depth (layer) index, innermost grid axis
    n_layers = pl.num_programs(1)

    bt, n, d = x_ref.shape                  # (B_TILE, N, D) batch tile
    rows = bt * n
    h, dh = heads, dim_head
    scale = dim_head ** (-0.5)
    bf16, f32 = jnp.bfloat16, jnp.float32

    # Load this batch tile from HBM only once (layer 0); carry it in f32 VMEM scratch.
    @pl.when(l == 0)
    def _():
        xc_ref[...] = x_ref[...].reshape(rows, d).astype(f32)

    x = xc_ref[...]                         # (rows, D) f32 carried activation

    # Packed per-layer vectors: rows = [ln1_w, ln1_b, bo, ln2_w, ln2_b, b2].
    pv = pvec_ref[...]                      # (6, D) f32
    ln1_w, ln1_b, bo = pv[0:1], pv[1:2], pv[2:3]
    ln2_w, ln2_b, b2 = pv[3:4], pv[4:5], pv[5:6]
    b1 = b1_ref[...]                        # (1, mlp_dim) f32

    # ---------------- Residual(PreNorm(Attention)) ----------------
    xn = _layernorm(x, ln1_w, ln1_b)
    # Single slab qkv projection on all B_TILE*N rows (bf16 MXU, f32 accumulate).
    qkv = jnp.dot(xn.astype(bf16), wqkv_ref[...],
                  preferred_element_type=f32)                      # (rows, 3*H*dh)

    # ONE head-major relayout; q/k/v are then static slices + leading-dim merges (free).
    qkvh = jnp.transpose(qkv.reshape(bt, n, 3 * h, dh), (0, 2, 1, 3))   # (bt, 3H, N, dh)
    q = (qkvh[:, 0:h] * scale).reshape(bt * h, n, dh).astype(bf16)      # scale folded in
    k = qkvh[:, h:2 * h].reshape(bt * h, n, dh).astype(bf16)
    v = qkvh[:, 2 * h:3 * h].reshape(bt * h, n, dh).astype(bf16)

    # Batched over (batch*heads) groups; contraction over last dims (no k.T materialized).
    dots = jnp.einsum('gnd,gmd->gnm', q, k, preferred_element_type=f32)  # (G, N, N) f32
    dots = dots - jnp.max(dots, axis=-1, keepdims=True)
    e = jnp.exp(dots)
    attn = e / jnp.sum(e, axis=-1, keepdims=True)                        # exact softmax
    o = jnp.einsum('gnm,gmd->gnd', attn.astype(bf16), v,
                   preferred_element_type=f32)                           # (G, N, dh)

    # Output projection WITHOUT un-transposing o: per-head (dh, D) weight slabs
    # (wo pre-laid-out as (H, dh, D) in the wrapper), batched matmul, sum over heads.
    wo_g = jnp.broadcast_to(wo_ref[...], (bt, h, dh, d)).reshape(bt * h, dh, d)
    proj = jnp.einsum('gnd,gde->gne', o.astype(bf16), wo_g,
                      preferred_element_type=f32)                        # (G, N, D)
    o_proj = jnp.sum(proj.reshape(bt, h, n, d), axis=1).reshape(rows, d) + bo
    x = x + _gelu_exact(o_proj)             # to_out = Linear -> GELU (Dropout identity)

    # ---------------- Residual(PreNorm(FeedForward)) ----------------
    xn2 = _layernorm(x, ln2_w, ln2_b)
    h1 = _gelu_exact(jnp.dot(xn2.astype(bf16), w1_ref[...],
                             preferred_element_type=f32) + b1)
    y = jnp.dot(h1.astype(bf16), w2_ref[...], preferred_element_type=f32) + b2
    x = x + y

    xc_ref[...] = x                         # carry to next layer

    @pl.when(l == n_layers - 1)
    def _():
        out_ref[...] = x.reshape(bt, n, d).astype(out_ref.dtype)


def transformer_forward(x, p, heads, dim_head, b_tile=None):
    """x: (B, N, D); p: dict of depth-stacked params (see init_params)."""
    B, N, D = x.shape
    inner = heads * dim_head
    depth = p["wqkv"].shape[0]
    mlp_dim = p["w1"].shape[-1]

    if b_tile is None:
        # Fold batch for MXU occupancy but keep >=2 batch blocks when possible (megacore).
        b_tile = max(1, B // 2) if B % 2 == 0 else 1
    assert B % b_tile == 0, "b_tile must divide batch"
    num_b_blocks = B // b_tile

    kernel = functools.partial(transformer_kernel, heads, dim_head)

    def wspec(*dims):
        # Depth-stacked parameter: pick layer l, squeeze leading depth dim.
        nd = len(dims)
        return pl.BlockSpec((None,) + dims, lambda b, l, _nd=nd: (l,) + (0,) * _nd)

    in_specs = [
        pl.BlockSpec((b_tile, N, D), lambda b, l: (b, 0, 0)),  # x batch tile (fetched
                                                               #  once per b: idx is l-free)
        wspec(6, D),                                           # packed LN/bias vectors
        wspec(1, mlp_dim),                                     # b1
        wspec(D, 3 * inner),                                   # Wqkv
        wspec(heads, dim_head, D),                             # Wo per-head layout
        wspec(D, mlp_dim),                                     # W1
        wspec(mlp_dim, D),                                     # W2
    ]
    out_spec = pl.BlockSpec((b_tile, N, D), lambda b, l: (b, 0, 0))

    return pl.pallas_call(
        kernel,
        out_shape=jax.ShapeDtypeStruct((B, N, D), x.dtype),
        grid=(num_b_blocks, depth),
        in_specs=in_specs,
        out_specs=out_spec,
        scratch_shapes=[pltpu.VMEM((b_tile * N, D), jnp.float32)],   # carried activation
        compiler_params=pltpu.CompilerParams(
            dimension_semantics=("parallel", "arbitrary"),
            # Well under v7x's 64 MiB physical VMEM; re-derive if B_TILE/N grow.
            vmem_limit_bytes=32 * 1024 * 1024),
    )(x, p["pvec"], p["b1"], p["wqkv"], p["wo"], p["w1"], p["w2"])


def init_params(key, depth, dim, heads, dim_head, mlp_dim):
    """Depth-stacked parameters. Matmul weights stored bf16 (MXU-native, halves weight
    DMA; ~1e-2-rel precision trade vs the f32 PyTorch reference); LayerNorm params and
    biases stay f32 (added on the f32 elementwise path)."""
    inner = heads * dim_head
    ks = jax.random.split(key, 6)

    def w(k, shape):
        return (0.05 * jax.random.normal(k, (depth,) + shape, jnp.float32)
                ).astype(jnp.bfloat16)

    pvec = jnp.stack([
        jnp.ones((depth, dim), jnp.float32),                                # ln1 weight
        jnp.zeros((depth, dim), jnp.float32),                               # ln1 bias
        0.05 * jax.random.normal(ks[2], (depth, dim), jnp.float32),         # to_out bias
        jnp.ones((depth, dim), jnp.float32),                                # ln2 weight
        jnp.zeros((depth, dim), jnp.float32),                               # ln2 bias
        jnp.zeros((depth, dim), jnp.float32),                               # ffn-2 bias
    ], axis=1)                                                              # (depth, 6, D)

    return {
        "pvec": pvec,
        "b1":   0.05 * jax.random.normal(ks[4], (depth, 1, mlp_dim), jnp.float32),
        "wqkv": w(ks[0], (dim, 3 * inner)),                                 # [q|k|v], (h d)
        "wo":   w(ks[1], (inner, dim)).reshape(depth, heads, dim_head, dim),
        "w1":   w(ks[3], (dim, mlp_dim)),
        "w2":   w(ks[5], (mlp_dim, dim)),
    }


def reference_forward(x, p, heads, dim_head):
    """Pure-JAX f32 reference mirroring the PyTorch module (same bf16-stored weights)."""
    B, N, D = x.shape
    inner = heads * dim_head
    depth = p["wqkv"].shape[0]
    scale = dim_head ** (-0.5)
    out = x.astype(jnp.float32)
    for l in range(depth):
        pv = p["pvec"][l].astype(jnp.float32)
        ln1_w, ln1_b, bo, ln2_w, ln2_b, b2 = (pv[i] for i in range(6))
        b1 = p["b1"][l, 0].astype(jnp.float32)
        wqkv = p["wqkv"][l].astype(jnp.float32)
        wo = p["wo"][l].astype(jnp.float32).reshape(inner, D)
        w1 = p["w1"][l].astype(jnp.float32)
        w2 = p["w2"][l].astype(jnp.float32)

        xn = _layernorm(out, ln1_w, ln1_b)
        qkv = (xn @ wqkv).reshape(B, N, 3, heads, dim_head)
        q = jnp.transpose(qkv[:, :, 0], (0, 2, 1, 3))
        k = jnp.transpose(qkv[:, :, 1], (0, 2, 1, 3))
        v = jnp.transpose(qkv[:, :, 2], (0, 2, 1, 3))
        dots = jnp.einsum('bhnd,bhmd->bhnm', q, k) * scale
        attn = jax.nn.softmax(dots, axis=-1)
        o = jnp.einsum('bhnm,bhmd->bhnd', attn, v)
        o = jnp.transpose(o, (0, 2, 1, 3)).reshape(B, N, inner)
        out = out + _gelu_exact(o @ wo + bo)

        xn2 = _layernorm(out, ln2_w, ln2_b)
        h1 = _gelu_exact(xn2 @ w1 + b1)
        out = out + (h1 @ w2 + b2)
    return out


if __name__ == "__main__":
    # Small shapes consistent with the module's forward: x is (b, n, dim).
    B, N = 4, 8
    dim, depth, heads, dim_head, mlp_dim = 32, 2, 4, 8, 64

    key = jax.random.PRNGKey(0)
    kx, kp = jax.random.split(key)
    x = jax.random.normal(kx, (B, N, dim), jnp.float32)
    params = init_params(kp, depth, dim, heads, dim_head, mlp_dim)

    out = transformer_forward(x, params, heads, dim_head, b_tile=2)   # 2 batch blocks
    out = jax.block_until_ready(out)
    assert out.shape == (B, N, dim) and out.dtype == jnp.float32

    ref = reference_forward(x, params, heads, dim_head)
    err = float(jnp.max(jnp.abs(out - ref)))
    assert err < 0.1, f"max abs error vs reference too large: {err}"
    print("KERNEL_OK")
</pallas_src>

<mosaic_0001>
module attributes {stable_mosaic.version = 11 : i64} {
  func.func @transformer_kernel(%arg0: i32, %arg1: i32, %arg2: memref<2x8x32xf32, #tpu.memory_space<vmem>>, %arg3: memref<1x6x32xf32, #tpu.memory_space<vmem>>, %arg4: memref<1x1x64xf32, #tpu.memory_space<vmem>>, %arg5: memref<1x32x96xbf16, #tpu.memory_space<vmem>>, %arg6: memref<1x4x8x32xbf16, #tpu.memory_space<vmem>>, %arg7: memref<1x32x64xbf16, #tpu.memory_space<vmem>>, %arg8: memref<1x64x32xbf16, #tpu.memory_space<vmem>>, %arg9: memref<2x8x32xf32, #tpu.memory_space<vmem>>, %arg10: memref<16x32xf32, #tpu.memory_space<vmem>>) attributes {dimension_semantics = [#tpu.dimension_semantics<parallel>, #tpu.dimension_semantics<arbitrary>], iteration_bounds = array<i64: 2, 2>, scalar_prefetch = 0 : i64, scratch_operands = 1 : i64, tpu.core_type = #tpu.core_type<tc>, window_params = [{transform_indices = @transform_0, window_bounds = array<i64: 2, 8, 32>}, {transform_indices = @transform_1, window_bounds = array<i64: 1, 6, 32>}, {transform_indices = @transform_2, window_bounds = array<i64: 1, 1, 64>}, {transform_indices = @transform_3, window_bounds = array<i64: 1, 32, 96>}, {transform_indices = @transform_4, window_bounds = array<i64: 1, 4, 8, 32>}, {transform_indices = @transform_5, window_bounds = array<i64: 1, 32, 64>}, {transform_indices = @transform_6, window_bounds = array<i64: 1, 64, 32>}, {transform_indices = @transform_7, window_bounds = array<i64: 2, 8, 32>}]} {
    %c0_i32 = arith.constant 0 : i32
    %0 = arith.cmpi eq, %arg1, %c0_i32 : i32
    %1 = arith.extui %0 : i1 to i32
    %c0_i32_0 = arith.constant 0 : i32
    %2 = arith.cmpi ne, %1, %c0_i32_0 : i32
    scf.if %2 {
      %c0_49 = arith.constant 0 : index
      %c0_50 = arith.constant 0 : index
      %c0_51 = arith.constant 0 : index
      %133 = vector.load %arg2[%c0_49, %c0_50, %c0_51] : memref<2x8x32xf32, #tpu.memory_space<vmem>>, vector<2x8x32xf32>
      %134 = vector.shape_cast %133 : vector<2x8x32xf32> to vector<16x32xf32>
      %c0_52 = arith.constant 0 : index
      %c0_53 = arith.constant 0 : index
      %135 = vector.load %arg10[%c0_52, %c0_53] : memref<16x32xf32, #tpu.memory_space<vmem>>, vector<16x32xf32>
      tpu.vector_store %arg10[%c0_52, %c0_53], %134 {strides = array<i32>} : memref<16x32xf32, #tpu.memory_space<vmem>>, vector<16x32xf32>,
    } else {
    }
    %c0 = arith.constant 0 : index
    %c0_1 = arith.constant 0 : index
    %3 = vector.load %arg10[%c0, %c0_1] : memref<16x32xf32, #tpu.memory_space<vmem>>, vector<16x32xf32>
    %c0_2 = arith.constant 0 : index
    %c0_3 = arith.constant 0 : index
    %c0_4 = arith.constant 0 : index
    %4 = vector.load %arg3[%c0_2, %c0_3, %c0_4] : memref<1x6x32xf32, #tpu.memory_space<vmem>>, vector<1x6x32xf32>
    %5 = vector.shape_cast %4 : vector<1x6x32xf32> to vector<6x32xf32>
    %6 = vector.extract_strided_slice %5 {offsets = [0, 0], sizes = [1, 32], strides = [1, 1]} : vector<6x32xf32> to vector<1x32xf32>
    %7 = vector.extract_strided_slice %5 {offsets = [1, 0], sizes = [1, 32], strides = [1, 1]} : vector<6x32xf32> to vector<1x32xf32>
    %8 = vector.extract_strided_slice %5 {offsets = [2, 0], sizes = [1, 32], strides = [1, 1]} : vector<6x32xf32> to vector<1x32xf32>
    %9 = vector.extract_strided_slice %5 {offsets = [3, 0], sizes = [1, 32], strides = [1, 1]} : vector<6x32xf32> to vector<1x32xf32>
    %10 = vector.extract_strided_slice %5 {offsets = [4, 0], sizes = [1, 32], strides = [1, 1]} : vector<6x32xf32> to vector<1x32xf32>
    %11 = vector.extract_strided_slice %5 {offsets = [5, 0], sizes = [1, 32], strides = [1, 1]} : vector<6x32xf32> to vector<1x32xf32>
    %c0_5 = arith.constant 0 : index
    %c0_6 = arith.constant 0 : index
    %c0_7 = arith.constant 0 : index
    %12 = vector.load %arg4[%c0_5, %c0_6, %c0_7] : memref<1x1x64xf32, #tpu.memory_space<vmem>>, vector<1x1x64xf32>
    %13 = vector.shape_cast %12 : vector<1x1x64xf32> to vector<1x64xf32>
    %cst = arith.constant dense<0.000000e+00> : vector<16xf32>
    %14 = vector.multi_reduction <add>, %3, %cst [1] : vector<16x32xf32> to vector<16xf32>
    %15 = vector.shape_cast %14 : vector<16xf32> to vector<16x1xf32>
    %cst_8 = arith.constant 3.200000e+01 : f32
    %16 = vector.broadcast %cst_8 : f32 to vector<16x1xf32>
    %17 = arith.divf %15, %16 : vector<16x1xf32>
    %18 = vector.broadcast %17 : vector<16x1xf32> to vector<16x32xf32>
    %19 = arith.subf %3, %18 : vector<16x32xf32>
    %20 = arith.mulf %19, %19 : vector<16x32xf32>
    %cst_9 = arith.constant dense<0.000000e+00> : vector<16xf32>
    %21 = vector.multi_reduction <add>, %20, %cst_9 [1] : vector<16x32xf32> to vector<16xf32>
    %22 = vector.shape_cast %21 : vector<16xf32> to vector<16x1xf32>
    %cst_10 = arith.constant 3.200000e+01 : f32
    %23 = vector.broadcast %cst_10 : f32 to vector<16x1xf32>
    %24 = arith.divf %22, %23 : vector<16x1xf32>
    %25 = vector.broadcast %17 : vector<16x1xf32> to vector<16x32xf32>
    %26 = arith.subf %3, %25 : vector<16x32xf32>
    %cst_11 = arith.constant 9.99999974E-6 : f32
    %27 = vector.broadcast %cst_11 : f32 to vector<16x1xf32>
    %28 = arith.addf %24, %27 : vector<16x1xf32>
    %29 = math.rsqrt %28 : vector<16x1xf32>
    %30 = vector.broadcast %29 : vector<16x1xf32> to vector<16x32xf32>
    %31 = arith.mulf %26, %30 : vector<16x32xf32>
    %32 = vector.broadcast %6 : vector<1x32xf32> to vector<16x32xf32>
    %33 = arith.mulf %31, %32 : vector<16x32xf32>
    %34 = vector.broadcast %7 : vector<1x32xf32> to vector<16x32xf32>
    %35 = arith.addf %33, %34 : vector<16x32xf32>
    %36 = arith.truncf %35 : vector<16x32xf32> to vector<16x32xbf16>
    %c0_12 = arith.constant 0 : index
    %c0_13 = arith.constant 0 : index
    %c0_14 = arith.constant 0 : index
    %37 = vector.load %arg5[%c0_12, %c0_13, %c0_14] : memref<1x32x96xbf16, #tpu.memory_space<vmem>>, vector<1x32x96xbf16>
    %38 = vector.shape_cast %37 : vector<1x32x96xbf16> to vector<32x96xbf16>
    %cst_15 = arith.constant dense<0.000000e+00> : vector<16x96xf32>
    %39 = tpu.matmul %36, %38, %cst_15 {dimension_numbers = #tpu.dot_dimension_numbers<[1], [0], [0], [1], [0, 0, 1, 1], [], []>} : vector<16x32xbf16>, vector<32x96xbf16>, vector<16x96xf32> -> vector<16x96xf32>
    %40 = vector.shape_cast %39 : vector<16x96xf32> to vector<2x8x12x8xf32>
    %41 = tpu.transpose %40, [0, 2, 1, 3] : vector<2x8x12x8xf32> -> vector<2x12x8x8xf32>
    %42 = vector.extract_strided_slice %41 {offsets = [0, 0, 0, 0], sizes = [2, 4, 8, 8], strides = [1, 1, 1, 1]} : vector<2x12x8x8xf32> to vector<2x4x8x8xf32>
    %cst_16 = arith.constant 0.353553385 : f32
    %43 = vector.broadcast %cst_16 : f32 to vector<2x4x8x8xf32>
    %44 = arith.mulf %42, %43 : vector<2x4x8x8xf32>
    %45 = vector.shape_cast %44 : vector<2x4x8x8xf32> to vector<8x8x8xf32>
    %46 = arith.truncf %45 : vector<8x8x8xf32> to vector<8x8x8xbf16>
    %47 = vector.extract_strided_slice %41 {offsets = [0, 4, 0, 0], sizes = [2, 4, 8, 8], strides = [1, 1, 1, 1]} : vector<2x12x8x8xf32> to vector<2x4x8x8xf32>
    %48 = vector.shape_cast %47 : vector<2x4x8x8xf32> to vector<8x8x8xf32>
    %49 = arith.truncf %48 : vector<8x8x8xf32> to vector<8x8x8xbf16>
    %50 = vector.extract_strided_slice %41 {offsets = [0, 8, 0, 0], sizes = [2, 4, 8, 8], strides = [1, 1, 1, 1]} : vector<2x12x8x8xf32> to vector<2x4x8x8xf32>
    %51 = vector.shape_cast %50 : vector<2x4x8x8xf32> to vector<8x8x8xf32>
    %52 = arith.truncf %51 : vector<8x8x8xf32> to vector<8x8x8xbf16>
    "tpu.trace_start"() <{level = 10 : i32, message = "gnd,gmd->gnm"}> : () -> ()
    %cst_17 = arith.constant dense<0.000000e+00> : vector<8x8x8xf32>
    %53 = tpu.matmul %46, %49, %cst_17 {dimension_numbers = #tpu.dot_dimension_numbers<[2], [2], [1], [1], [0, 0, 0, 1, 1, 1], [0], [0]>} : vector<8x8x8xbf16>, vector<8x8x8xbf16>, vector<8x8x8xf32> -> vector<8x8x8xf32>
    "tpu.trace_stop"() : () -> ()
    %cst_18 = arith.constant dense<0xFF800000> : vector<8x8xf32>
    %54 = vector.multi_reduction <maximumf>, %53, %cst_18 [2] : vector<8x8x8xf32> to vector<8x8xf32>
    %55 = vector.shape_cast %54 : vector<8x8xf32> to vector<8x8x1xf32>
    %56 = vector.broadcast %55 : vector<8x8x1xf32> to vector<8x8x8xf32>
    %57 = arith.subf %53, %56 : vector<8x8x8xf32>
    %58 = math.exp %57 : vector<8x8x8xf32>
    %cst_19 = arith.constant dense<0.000000e+00> : vector<8x8xf32>
    %59 = vector.multi_reduction <add>, %58, %cst_19 [2] : vector<8x8x8xf32> to vector<8x8xf32>
    %60 = vector.shape_cast %59 : vector<8x8xf32> to vector<8x8x1xf32>
    %61 = vector.broadcast %60 : vector<8x8x1xf32> to vector<8x8x8xf32>
    %62 = arith.divf %58, %61 : vector<8x8x8xf32>
    %63 = arith.truncf %62 : vector<8x8x8xf32> to vector<8x8x8xbf16>
    "tpu.trace_start"() <{level = 10 : i32, message = "gnm,gmd->gnd"}> : () -> ()
    %cst_20 = arith.constant dense<0.000000e+00> : vector<8x8x8xf32>
    %64 = tpu.matmul %63, %52, %cst_20 {dimension_numbers = #tpu.dot_dimension_numbers<[2], [1], [1], [2], [0, 0, 0, 1, 1, 2], [0], [0]>} : vector<8x8x8xbf16>, vector<8x8x8xbf16>, vector<8x8x8xf32> -> vector<8x8x8xf32>
    "tpu.trace_stop"() : () -> ()
    %c0_21 = arith.constant 0 : index
    %c0_22 = arith.constant 0 : index
    %c0_23 = arith.constant 0 : index
    %c0_24 = arith.constant 0 : index
    %65 = vector.load %arg6[%c0_21, %c0_22, %c0_23, %c0_24] : memref<1x4x8x32xbf16, #tpu.memory_space<vmem>>, vector<1x4x8x32xbf16>
    %66 = vector.shape_cast %65 : vector<1x4x8x32xbf16> to vector<4x8x32xbf16>
    %67 = vector.shape_cast %66 : vector<4x8x32xbf16> to vector<1x4x8x32xbf16>
    %68 = vector.broadcast %67 : vector<1x4x8x32xbf16> to vector<2x4x8x32xbf16>
    %69 = vector.shape_cast %68 : vector<2x4x8x32xbf16> to vector<8x8x32xbf16>
    %70 = arith.truncf %64 : vector<8x8x8xf32> to vector<8x8x8xbf16>
    "tpu.trace_start"() <{level = 10 : i32, message = "gnd,gde->gne"}> : () -> ()
    %cst_25 = arith.constant dense<0.000000e+00> : vector<8x8x32xf32>
    %71 = tpu.matmul %70, %69, %cst_25 {dimension_numbers = #tpu.dot_dimension_numbers<[2], [1], [1], [2], [0, 0, 0, 1, 1, 2], [0], [0]>} : vector<8x8x8xbf16>, vector<8x8x32xbf16>, vector<8x8x32xf32> -> vector<8x8x32xf32>
    "tpu.trace_stop"() : () -> ()
    %72 = vector.shape_cast %71 : vector<8x8x32xf32> to vector<2x4x8x32xf32>
    %cst_26 = arith.constant dense<0.000000e+00> : vector<2x8x32xf32>
    %73 = vector.multi_reduction <add>, %72, %cst_26 [1] : vector<2x4x8x32xf32> to vector<2x8x32xf32>
    %74 = vector.shape_cast %73 : vector<2x8x32xf32> to vector<16x32xf32>
    %75 = vector.broadcast %8 : vector<1x32xf32> to vector<16x32xf32>
    %76 = arith.addf %74, %75 : vector<16x32xf32>
    %cst_27 = arith.constant 5.000000e-01 : f32
    %77 = vector.broadcast %cst_27 : f32 to vector<16x32xf32>
    %78 = arith.mulf %77, %76 : vector<16x32xf32>
    %cst_28 = arith.constant 0.707106769 : f32
    %79 = vector.broadcast %cst_28 : f32 to vector<16x32xf32>
    %80 = arith.mulf %76, %79 : vector<16x32xf32>
    %81 = math.erf %80 : vector<16x32xf32>
    %cst_29 = arith.constant 1.000000e+00 : f32
    %82 = vector.broadcast %cst_29 : f32 to vector<16x32xf32>
    %83 = arith.addf %82, %81 : vector<16x32xf32>
    %84 = arith.mulf %78, %83 : vector<16x32xf32>
    %85 = arith.addf %3, %84 : vector<16x32xf32>
    %cst_30 = arith.constant dense<0.000000e+00> : vector<16xf32>
    %86 = vector.multi_reduction <add>, %85, %cst_30 [1] : vector<16x32xf32> to vector<16xf32>
    %87 = vector.shape_cast %86 : vector<16xf32> to vector<16x1xf32>
    %cst_31 = arith.constant 3.200000e+01 : f32
    %88 = vector.broadcast %cst_31 : f32 to vector<16x1xf32>
    %89 = arith.divf %87, %88 : vector<16x1xf32>
    %90 = vector.broadcast %89 : vector<16x1xf32> to vector<16x32xf32>
    %91 = arith.subf %85, %90 : vector<16x32xf32>
    %92 = arith.mulf %91, %91 : vector<16x32xf32>
    %cst_32 = arith.constant dense<0.000000e+00> : vector<16xf32>
    %93 = vector.multi_reduction <add>, %92, %cst_32 [1] : vector<16x32xf32> to vector<16xf32>
    %94 = vector.shape_cast %93 : vector<16xf32> to vector<16x1xf32>
    %cst_33 = arith.constant 3.200000e+01 : f32
    %95 = vector.broadcast %cst_33 : f32 to vector<16x1xf32>
    %96 = arith.divf %94, %95 : vector<16x1xf32>
    %97 = vector.broadcast %89 : vector<16x1xf32> to vector<16x32xf32>
    %98 = arith.subf %85, %97 : vector<16x32xf32>
    %cst_34 = arith.constant 9.99999974E-6 : f32
    %99 = vector.broadcast %cst_34 : f32 to vector<16x1xf32>
    %100 = arith.addf %96, %99 : vector<16x1xf32>
    %101 = math.rsqrt %100 : vector<16x1xf32>
    %102 = vector.broadcast %101 : vector<16x1xf32> to vector<16x32xf32>
    %103 = arith.mulf %98, %102 : vector<16x32xf32>
    %104 = vector.broadcast %9 : vector<1x32xf32> to vector<16x32xf32>
    %105 = arith.mulf %103, %104 : vector<16x32xf32>
    %106 = vector.broadcast %10 : vector<1x32xf32> to vector<16x32xf32>
    %107 = arith.addf %105, %106 : vector<16x32xf32>
    %108 = arith.truncf %107 : vector<16x32xf32> to vector<16x32xbf16>
    %c0_35 = arith.constant 0 : index
    %c0_36 = arith.constant 0 : index
    %c0_37 = arith.constant 0 : index
    %109 = vector.load %arg7[%c0_35, %c0_36, %c0_37] : memref<1x32x64xbf16, #tpu.memory_space<vmem>>, vector<1x32x64xbf16>
    %110 = vector.shape_cast %109 : vector<1x32x64xbf16> to vector<32x64xbf16>
    %cst_38 = arith.constant dense<0.000000e+00> : vector<16x64xf32>
    %111 = tpu.matmul %108, %110, %cst_38 {dimension_numbers = #tpu.dot_dimension_numbers<[1], [0], [0], [1], [0, 0, 1, 1], [], []>} : vector<16x32xbf16>, vector<32x64xbf16>, vector<16x64xf32> -> vector<16x64xf32>
    %112 = vector.broadcast %13 : vector<1x64xf32> to vector<16x64xf32>
    %113 = arith.addf %111, %112 : vector<16x64xf32>
    %cst_39 = arith.constant 5.000000e-01 : f32
    %114 = vector.broadcast %cst_39 : f32 to vector<16x64xf32>
    %115 = arith.mulf %114, %113 : vector<16x64xf32>
    %cst_40 = arith.constant 0.707106769 : f32
    %116 = vector.broadcast %cst_40 : f32 to vector<16x64xf32>
    %117 = arith.mulf %113, %116 : vector<16x64xf32>
    %118 = math.erf %117 : vector<16x64xf32>
    %cst_41 = arith.constant 1.000000e+00 : f32
    %119 = vector.broadcast %cst_41 : f32 to vector<16x64xf32>
    %120 = arith.addf %119, %118 : vector<16x64xf32>
    %121 = arith.mulf %115, %120 : vector<16x64xf32>
    %122 = arith.truncf %121 : vector<16x64xf32> to vector<16x64xbf16>
    %c0_42 = arith.constant 0 : index
    %c0_43 = arith.constant 0 : index
    %c0_44 = arith.constant 0 : index
    %123 = vector.load %arg8[%c0_42, %c0_43, %c0_44] : memref<1x64x32xbf16, #tpu.memory_space<vmem>>, vector<1x64x32xbf16>
    %124 = vector.shape_cast %123 : vector<1x64x32xbf16> to vector<64x32xbf16>
    %cst_45 = arith.constant dense<0.000000e+00> : vector<16x32xf32>
    %125 = tpu.matmul %122, %124, %cst_45 {dimension_numbers = #tpu.dot_dimension_numbers<[1], [0], [0], [1], [0, 0, 1, 1], [], []>} : vector<16x64xbf16>, vector<64x32xbf16>, vector<16x32xf32> -> vector<16x32xf32>
    %126 = vector.broadcast %11 : vector<1x32xf32> to vector<16x32xf32>
    %127 = arith.addf %125, %126 : vector<16x32xf32>
    %128 = arith.addf %85, %127 : vector<16x32xf32>
    %c0_46 = arith.constant 0 : index
    %c0_47 = arith.constant 0 : index
    %129 = vector.load %arg10[%c0_46, %c0_47] : memref<16x32xf32, #tpu.memory_space<vmem>>, vector<16x32xf32>
    tpu.vector_store %arg10[%c0_46, %c0_47], %128 {strides = array<i32>} : memref<16x32xf32, #tpu.memory_space<vmem>>, vector<16x32xf32>,
    %c1_i32 = arith.constant 1 : i32
    %130 = arith.cmpi eq, %arg1, %c1_i32 : i32
    %131 = arith.extui %130 : i1 to i32
    %c0_i32_48 = arith.constant 0 : i32
    %132 = arith.cmpi ne, %131, %c0_i32_48 : i32
    scf.if %132 {
      %133 = vector.shape_cast %128 : vector<16x32xf32> to vector<2x8x32xf32>
      %c0_49 = arith.constant 0 : index
      %c0_50 = arith.constant 0 : index
      %c0_51 = arith.constant 0 : index
      %134 = vector.load %arg9[%c0_49, %c0_50, %c0_51] : memref<2x8x32xf32, #tpu.memory_space<vmem>>, vector<2x8x32xf32>
      tpu.vector_store %arg9[%c0_49, %c0_50, %c0_51], %133 {strides = array<i32>} : memref<2x8x32xf32, #tpu.memory_space<vmem>>, vector<2x8x32xf32>,
    } else {
    }
    return
  }
  func.func @transform_0(%arg0: i32, %arg1: i32) -> (i32, i32, i32) {
    %c0_i32 = arith.constant 0 : i32
    %c0_i32_0 = arith.constant 0 : i32
    %c0_i32_1 = arith.constant 0 : i32
    return %arg0, %c0_i32, %c0_i32_0 : i32, i32, i32
  }
  func.func @transform_1(%arg0: i32, %arg1: i32) -> (i32, i32, i32) {
    %c0_i32 = arith.constant 0 : i32
    %c0_i32_0 = arith.constant 0 : i32
    %c0_i32_1 = arith.constant 0 : i32
    return %arg1, %c0_i32, %c0_i32_0 : i32, i32, i32
  }
  func.func @transform_2(%arg0: i32, %arg1: i32) -> (i32, i32, i32) {
    %c0_i32 = arith.constant 0 : i32
    %c0_i32_0 = arith.constant 0 : i32
    %c0_i32_1 = arith.constant 0 : i32
    return %arg1, %c0_i32, %c0_i32_0 : i32, i32, i32
  }
  func.func @transform_3(%arg0: i32, %arg1: i32) -> (i32, i32, i32) {
    %c0_i32 = arith.constant 0 : i32
    %c0_i32_0 = arith.constant 0 : i32
    %c0_i32_1 = arith.constant 0 : i32
    return %arg1, %c0_i32, %c0_i32_0 : i32, i32, i32
  }
  func.func @transform_4(%arg0: i32, %arg1: i32) -> (i32, i32, i32, i32) {
    %c0_i32 = arith.constant 0 : i32
    %c0_i32_0 = arith.constant 0 : i32
    %c0_i32_1 = arith.constant 0 : i32
    %c0_i32_2 = arith.constant 0 : i32
    return %arg1, %c0_i32, %c0_i32_0, %c0_i32_1 : i32, i32, i32, i32
  }
  func.func @transform_5(%arg0: i32, %arg1: i32) -> (i32, i32, i32) {
    %c0_i32 = arith.constant 0 : i32
    %c0_i32_0 = arith.constant 0 : i32
    %c0_i32_1 = arith.constant 0 : i32
    return %arg1, %c0_i32, %c0_i32_0 : i32, i32, i32
  }
  func.func @transform_6(%arg0: i32, %arg1: i32) -> (i32, i32, i32) {
    %c0_i32 = arith.constant 0 : i32
    %c0_i32_0 = arith.constant 0 : i32
    %c0_i32_1 = arith.constant 0 : i32
    return %arg1, %c0_i32, %c0_i32_0 : i32, i32, i32
  }
  func.func @transform_7(%arg0: i32, %arg1: i32) -> (i32, i32, i32) {
    %c0_i32 = arith.constant 0 : i32
    %c0_i32_0 = arith.constant 0 : i32
    %c0_i32_1 = arith.constant 0 : i32
    return %arg0, %c0_i32, %c0_i32_0 : i32, i32, i32
  }
}

</mosaic_0001>

<bundles_post_ra>
// kernel: tpu_custom_call.1
= control target key start
LH: loop header
LB: loop body
LE: loop exit
PB: predicated region body
PF: predicated region fallthrough
CT: control target
= control target key end

     0   :  { %s3833_s0 = inlined_call_operand.vmem [shape: f32[4,8,32], index: 0, kind: input, shape index: {}]   ;;  %s3834_s1 = inlined_call_operand.vmem [shape: f32[2,6,32], index: 1, kind: input, shape index: {}]   ;;  %s3835_s2 = inlined_call_operand.hbm [shape: f32[2,1,64], index: 2, kind: input, shape index: {}]   ;;  %s3836_s3 = inlined_call_operand.vmem [shape: bf16[2,32,96], index: 3, kind: input, shape index: {}]   ;;  %s3837_s4 = inlined_call_operand.vmem [shape: bf16[2,4,8,32], index: 4, kind: input, shape index: {}]   ;;  %s3838_s5 = inlined_call_operand.hbm [shape: bf16[2,32,64], index: 5, kind: input, shape index: {}]   ;;  %s3839_s6 = inlined_call_operand.vmem [shape: bf16[2,64,32], index: 6, kind: input, shape index: {}]   ;;  %s3840_s7 = inlined_call_operand.hbm [shape: f32[4,8,32], index: 7, kind: output, shape index: {}]  }
   0x1   :  { %3851 = sst [smem:[#allocation23_spill]] %s3835_s2 }
   0x2   :  { %3852 = sst [smem:[#allocation24_spill]] %s3838_s5 }
   0x3   :  { %12 = vsyncpa [#allocation4], 0 }
   0x4   :  { %14 = vsyncpa [#allocation4 + $0x1], 0 }
   0x5   :  { %15 = vsyncpa [#allocation7], 0 }
   0x6   :  { %17 = vsyncpa [#allocation7 + $0x1], 0 }
   0x7   :  { %18 = vsyncpa [#allocation5], 0 }
   0x8   :  { %20 = vsyncpa [#allocation5 + $0x1], 0  ;;  %s3049_s24 = smov 0   ;;  %s3051_s25 = smov 0  }
   0x9   :  { %s3053_s26 = smov 0   ;;  %s3055_s27 = smov 0  }
   0xa   :  { %s3057_s28 = smov 0   ;;  %s3059_s29 = smov 0  }
   0xb   :  { %s3061_s30 = smov 0   ;;  %s3063_s8 = smov 0  }
   0xc   :  { %s3065_s9 = smov 0   ;;  %s3067_s10 = smov 0  }
   0xd   :  { %s3069_s11 = smov 0  }
   0xe LB: > { %3853 = sst [smem:[#allocation12_spill]] %s2949_s24  ;;  %s2502_s12 = sadd.s32 4294967295, %s2989_s11   ;;  %s2989_s11 = sphi %s3069_s11, %s26_s11   ;;  %s2985_s10 = sphi %s3067_s10, %s3887_s10   ;;  %s2981_s9 = sphi %s3065_s9, %s3882_s9   ;;  %s2977_s8 = sphi %s3063_s8, %s3881_s8   ;;  %s2973_s30 = sphi %s3061_s30, %s3880_s30   ;;  %s2969_s29 = sphi %s3059_s29, %s3886_s29   ;;  %s2965_s28 = sphi %s3057_s28, %s3878_s28   ;;  %s2961_s27 = sphi %s3055_s27, %s3877_s27   ;;  %s2957_s26 = sphi %s3053_s26, %s3876_s26   ;;  %s2953_s25 = sphi %s3051_s25, %s3885_s25   ;;  %s2949_s24 = sphi %s3049_s24, %s3884_s24  }
   0xf   : > { %3854 = sst [smem:[#allocation13_spill]] %s2957_s26  ;;  %s2503_s13 = sadd.s32 4294967294, %s2989_s11  }
  0x10   : > { %3855 = sst [smem:[#allocation14_spill]] %s2965_s28  ;;  %s35_s14 = sadd.s32 1, %s2981_s9 }
  0x11   : > { %3856 = sst [smem:[#allocation15_spill]] %s2969_s29  ;;  %s38_s15 = sadd.s32 1, %s2985_s10 }
  0x12   : > { %3857 = sst [smem:[#allocation16_spill]] %s2981_s9  ;;  %p36_p0 = scmp.ge.s32.totalorder %s35_s14, 2 }
  0x13   : > { %3858 = sst [smem:[#allocation17_spill]] %s2985_s10  ;;  %s97_s16 = sadd.s32 1, %s2969_s29 }
  0x14   : > { %p104_p1 = scmp.ne.s32.totalorder %s2969_s29, %s2965_s28  ;;  %p105_p2 = scmp.eq.s32.totalorder %s2989_s11, 0 }
  0x15   : > { %s3889_s14 = smov (%p36_p0, %s35_s14), 0  ;;  %s3891_s15 = smov (!%p36_p0, %s38_s15), %s2985_s10 }
  0x16   : > { %3859 = sst [smem:[#allocation18_spill]] %s3889_s14  ;;  %s94_s17 = ssub.s32 %s2981_s9, %s3889_s14 }
  0x17   : > { %p3115_p3 = por %p105_p2, %p104_p1  ;;  %p40_p4 = scmp.ge.s32.totalorder %s3891_s15, 2 }
  0x18   : > { %p95_p5 = scmp.eq.s32.totalorder %s94_s17, 0  ;;  %p110_p6 = scmp.ne.s32.totalorder %s2965_s28, %s2961_s27 }
  0x19   : > { %p111_p7 = scmp.eq.s32.totalorder %s2502_s12, 0  ;;  %s3893_s15 = smov (%p40_p4, %s3891_s15), 0 }
  0x1a   : > { %3861 = sst [smem:[#allocation19_spill]] %s3893_s15  ;;  %s224_s21 = ssub.s32 %s2985_s10, %s3893_s15 }
  0x1b   : > { %s3123_s19 = scalar_select %p95_p5, %s2969_s29, %s97_s16  }
  0x1c   : > { %p3125_p8 = por %p111_p7, %p110_p6  ;;  %p225_p9 = scmp.eq.s32.totalorder %s224_s21, 0 }
  0x1d   : > { %3862 = sst [smem:[#allocation20_spill]] %s3123_s19  ;;  %s227_s22 = sadd.s32 1, %s2957_s26 }
  0x1e   : > { %p237_p10 = scmp.ne.s32.totalorder %s2957_s26, %s2953_s25  ;;  %p238_p11 = scmp.eq.s32.totalorder %s2502_s12, 3 }
  0x1f   : > { %s3135_s23 = scalar_select %p225_p9, %s2957_s26, %s227_s22  }
  0x20   : > { %p3137_p12 = por %p238_p11, %p237_p10  ;;  %p243_p13 = scmp.ne.s32.totalorder %s2953_s25, %s2949_s24 }
  0x21   : > { %3864 = sst [smem:[#allocation21_spill]] %s3135_s23  ;;  %p244_p0 = scmp.eq.s32.totalorder %s2503_s13, 3 }
  0x22   : > { %p2621_p1 = scmp.lt.s32.totalorder %s2989_s11, 4  ;;  %s3145_s16 = sand.u32 1, %s2969_s29  }
  0x23   : > { %p3147_p2 = por %p244_p0, %p243_p13  ;;  %s3868_s2 = sld [smem:[#allocation23_spill]] }
  0x24   : > { %s283_s14 = scalar_lea.vmem [#allocation3], %s3145_s16  ;;  %p3158_p4 = pnand %p2621_p1, %p3115_p3 }
  0x25   : > { %s3866_s17 = scalar_select %p3147_p2, 1, 0 }
  0x26   : > { %s290_s10 = sshll.u32 %s283_s14, 4  ;;  %p2509_p5 = scmp.ge.s32.totalorder %s2989_s11, 1  ;;  %s291_s10 = int_to_ptr.vmem [resolvable:$true] %s290_s10 }
  0x27   : > { %3867 = sst [smem:[#allocation22_spill]] %s3866_s17  ;;  %p341_p6 = scmp.lt.s32.totalorder %s2989_s11, 5 }
  0x28   : > { %s2506_s19 = sshll.u32 %s3145_s16, 4  ;;  %s281_s29 = scalar_lea.sflag [#allocation4], %s3145_s16 }
  0x29   : > { %s286_s22 = scalar_lea.hbm %s3868_s2, %s2981_s9  ;;  %p342_p7 = pnand %p2509_p5, %p341_p6 }
  0x2a   : > { %s288_s15 = sshll.u32 %s286_s22, 4  ;;  %s2591_s12 = sshll.u32 %s2981_s9, 4  ;;  %s289_s15 = int_to_ptr.hbm [resolvable:$true] %s288_s15 }
  0x2b   : > { %2613 = dma.hbm_to_vmem [thread:$0]  (!%p3158_p4), %s289_s15, 16, %s291_s10, %s281_s29  }
  0x2c   : > { %s317_s21 = scalar_lea.vmem [#allocation6], %s2506_s19  ;;  %s3870_s5 = sld [smem:[#allocation24_spill]] }
  0x2d   : > { %s325_s14 = sshll.u32 %s317_s21, 4  ;;  %s314_s26 = scalar_lea.sflag [#allocation7], %s3145_s16  ;;  %s326_s14 = int_to_ptr.vmem [resolvable:$true] %s325_s14 }
  0x2e   : > { %s2991_s17 = smov 64   ;;  %s2992_s24 = smov 4  }
  0x2f   : > { %s3176_s29 = sand.u32 (!%p342_p7), 1, %s2965_s28  }
  0x30   : > { %345 = sbr.rel (%p342_p7) target bundleno = 2027 (0x7eb), region = 48  ;;  %s348_s10 = scalar_lea.sflag (!%p342_p7), [#allocation4], %s3176_s29 }
  0x32   : > { %s322_s18 = scalar_lea.hbm %s3870_s5, %s2591_s12 }
  0x33   : > { %s323_s23 = sshll.u32 %s322_s18, 4  ;;  %s324_s23 = int_to_ptr.hbm [resolvable:$true] %s323_s23 }
  0x34   : > { %2616 = dma.hbm_to_vmem [thread:$0]  (!%p3158_p4), %s324_s23, 256, %s326_s14, %s314_s26, %s2991_s17, %s2991_s17, %s2992_s24  }
  0x35   : > { %2936 = dma.done.wait (%p3125_p8), %s348_s10, 16  }
  0x36   : > { %2938 = vsyncadd (%p3125_p8), %s348_s10, 4294967280  ;;  %s2510_s2 = sshll.u32 %s3176_s29, 4  ;;  %s357_s19 = scalar_lea.sflag [#allocation7], %s3176_s29 }
  0x37   : > { %s3186_s24 = scalar_lea.vmem [#allocation6], %s2510_s2 }
  0x38   : > { %2940 = dma.done.wait (%p3125_p8), %s357_s19, 256  }
  0x39   : > { %2942 = vsyncadd (%p3125_p8), %s357_s19, 4294967040  ;;  %s3848_s26 = sand.u32 1, %s2953_s25   ;;  %s2512_s23 = sshll.u32 %s2977_s8, 1 }
  0x3a   : > { %s2511_s16 = sshll.u32 %s3848_s26, 4  ;;  %p421_p3 = scmp.lt.s32.totalorder %s2512_s23, 3 }
  0x3b   : > { %p426_p9 = scmp.lt.s32.totalorder %s2973_s30, 1  ;;  %s3221_s22 = scalar_lea.vmem [#allocation8], %s2511_s16 }
  0x3c   : > { %s3895_s23 = smov (!%p421_p3, %s2512_s23), 3  ;;  %p2521_p8 = scmp.ne.s32.totalorder %s2973_s30, 0 }
  0x3d   : > { %s427_s17 = scalar_select %p426_p9, %s2973_s30, 1 }
  0x3e   : > { %s2513_s13 = sshll.u32 %s3895_s23, 3 }
  0x3f   : > { %s424_s14 = scalar_lea.vmem %s3833_s0, %s2513_s13  ;;  %s2514_s20 = sshll.u32 %s427_s17, 3 }
  0x40   : > { %s3204_s10 = scalar_lea.vmem %s3834_s1, %s2514_s20  ;;  %s2592_s2 = sshll.u32 %s427_s17, 4 }
  0x41   : > { %s3209_s26 = scalar_lea.vmem %s3836_s3, %s2592_s2  ;;  %s3214_s23 = scalar_lea.vmem %s3837_s4, %s2592_s2 }
  0x42   : > { %s2594_s28 = sshll.u32 %s427_s17, 5  ;;  %450 = sbr.rel (%p2521_p8) target bundleno = 74 (0x4a), region = 60 }
  0x43   : > { %s3219_s21 = scalar_lea.vmem %s3839_s6, %s2594_s28 }
  0x47   : > { %v451_v0 = vld [vmem:[%s424_s14] sm:$0xff]  ;;  %vm453_vm0 = vcmask 261120   ;;  %v452_v1 = vld [vmem:[%s424_s14 + $0x8] sm:$0xff] }
  0x48   : > { %454 = vst.msk [vmem:[#allocation2] sm:$0xff] %vm453_vm0, %v451_v0 }
  0x49   : > { %455 = vst.msk [vmem:[#allocation2 + $0x8] sm:$0xff] %vm453_vm0, %v452_v1 }
  0x4a PF: > { %vm460_vm1 = vcmask 261120   ;;  %v2993_v6 = vmov 32.0   ;;  %v2596_v23 = vld [vmem:[%s3209_s26 + $0x8] sm:$0xff]  ;;  %v2595_v25 = vld [vmem:[%s3209_s26] sm:$0xff]  ;;  %s2994_s5 = smov 88   ;;  %s2995_s28 = smov 112  }
  0x4b   : > { %2750 = vrcp.f32 %v2993_v6  ;;  %544 = vmatpush.bf16.msra.mxu0 %v2596_v23  ;;  %v458_v42 = vld [vmem:[%s3204_s10] sm:$0x3f]  ;;  %s2996_s9 = smov 104   ;;  %s2997_s15 = smov 120   ;;  %v3002_v62 = vmov 1983009808  }
  0x4c   : > { %v512_v45 = vperm.slane %v458_v42, 0  ;;  %v515_v50 = vperm.slane %v458_v42, 1  ;;  %s2998_s26 = smov 96   ;;  %s2999_s16 = smov 72   ;;  %v626_v63 = vunpack.c.l.s4 %v3002_v62  ;;  %vm621_vm9 = vcmask 1047556  }
  0x4d   : > { %s3000_s17 = smov 80   ;;  %s3001_s14 = smov 48   ;;  %vm1321_vm10 = vcmask 64512   ;;  %vm1677_vm11 = vcmask 1043456  }
  0x4e   : > { %s3004_s20 = smov 64   ;;  %s3005_s18 = smov 56  }
  0x4f   : > { %v456_v2 = vld [vmem:[#allocation2] sm:$0xff]  ;;  %545 = vmatpush.bf16.msra.mxu0 %v2595_v25  ;;  %s3006_s2 = smov 40   ;;  %p2585_p10 = scmp.ne.s32.totalorder %s2973_s30, 1 }
  0x50   : > { %v461_v3 = vsel %vm460_vm1, %v456_v2, 0.0  ;;  %v457_v4 = vld [vmem:[#allocation2 + $0x8] sm:$0xff] }
  0x51   : > { %462 = vadd.xlane.f32.xlu0 %v461_v3  ;;  %v464_v5 = vsel %vm460_vm1, %v457_v4, 0.0  ;;  %v2751_v7 = vpop.eup %2750 }
  0x52   : > { %v468_v8 = vmul.f32 32.0, %v2751_v7  ;;  %vm472_vm2 = vweird.f32 %v2751_v7 }
  0x54   : > { %v469_v9 = vsub.f32 1.0, %v468_v8 }
  0x56   : > { %v470_v10 = vmul.f32 %v2751_v7, %v469_v9  ;;  %v3003_v9 = vmov 1934713408  }
  0x58   : > { %v471_v11 = vadd.f32 %v2751_v7, %v470_v10  ;;  %v674_v10 = vunpack.c.l.s4 %v3003_v9 }
  0x59   : > { %465 = vadd.xlane.f32.xlu0 %v464_v5 }
  0x5a   : > { %v3226_v12 = vsel %vm472_vm2, %v2751_v7, %v471_v11  ;;  %v3263_v23 = vunpack.c.0.s8 %v674_v10 }
  0xc4   : > { %v463_v13 = vpop.xlane.xlu0 %462 }
  0xc5   : > { %v474_v14 = vmul.f32 %v3226_v12, %v463_v13 }
  0xc7   : > { %v476_v15 = vsub.f32 %v456_v2, %v474_v14  ;;  %v3252_v2 = vunpack.c.0.s8 %v626_v63 }
  0xc9   : > { %v478_v16 = vmul.f32 %v476_v15, %v476_v15 }
  0xcb   : > { %v480_v17 = vsel %vm460_vm1, %v478_v16, 0.0 }
  0xcc   : > { %481 = vadd.xlane.f32.xlu1 %v480_v17  ;;  %v466_v18 = vpop.xlane.xlu0 %465 }
  0xcd   : > { %v475_v19 = vmul.f32 %v3226_v12, %v466_v18 }
  0xcf   : > { %v477_v20 = vsub.f32 %v457_v4, %v475_v19 }
  0xd1   : > { %v479_v21 = vmul.f32 %v477_v20, %v477_v20 }
  0xd3   : > { %v483_v22 = vsel %vm460_vm1, %v479_v21, 0.0 }
  0xd4   : > { %484 = vadd.xlane.f32.xlu1 %v483_v22 }
 0x13f   : > { %v482_v24 = vpop.xlane.xlu1 %481 }
 0x140   : > { %v486_v26 = vmul.f32 %v482_v24, %v3226_v12 }
 0x142   : > { %v488_v27 = vadd.f32 1e-05, %v486_v26 }
 0x144   : > { %2752 = vrsqrt.f32 %v488_v27  ;;  %vm496_vm4 = vweird.f32 %v488_v27 }
 0x147   : > { %v485_v28 = vpop.xlane.xlu1 %484 }
 0x148   : > { %v487_v29 = vmul.f32 %v485_v28, %v3226_v12 }
 0x14a   : > { %v2753_v30 = vpop.eup %2752  ;;  %v489_v31 = vadd.f32 1e-05, %v487_v29 }
 0x14b   : > { %v491_v32 = vmul.f32 %v2753_v30, %v488_v27  ;;  %vm497_vm3 = vweird.f32 %v2753_v30 }
 0x14c   : > { %2754 = vrsqrt.f32 %v489_v31  ;;  %vm498_vm5 = vmor %vm496_vm4, %vm497_vm3  ;;  %vm506_vm7 = vweird.f32 %v489_v31 }
 0x14d   : > { %v492_v33 = vmul.f32 %v2753_v30, %v491_v32 }
 0x14f   : > { %v493_v34 = vmul.f32 0.5, %v492_v33 }
 0x151   : > { %v494_v35 = vsub.f32 1.5, %v493_v34 }
 0x152   : > { %v2755_v36 = vpop.eup %2754 }
 0x153   : > { %v495_v37 = vmul.f32 %v2753_v30, %v494_v35  ;;  %v501_v38 = vmul.f32 %v2755_v36, %v489_v31  ;;  %vm507_vm6 = vweird.f32 %v2755_v36 }
 0x154   : > { %vm508_vm8 = vmor %vm506_vm7, %vm507_vm6 }
 0x155   : > { %v502_v39 = vmul.f32 %v2755_v36, %v501_v38  ;;  %v499_v40 = vsel %vm498_vm5, %v2753_v30, %v495_v37 }
 0x156   : > { %v510_v44 = vmul.f32 %v499_v40, %v476_v15 }
 0x157   : > { %v503_v41 = vmul.f32 0.5, %v502_v39 }
 0x158   : > { %v513_v49 = vmul.f32 %v512_v45, %v510_v44 }
 0x159   : > { %v504_v43 = vsub.f32 1.5, %v503_v41 }
 0x15a   : > { %v516_v52 = vadd.f32 %v515_v50, %v513_v49 }
 0x15b   : > { %v505_v46 = vmul.f32 %v2755_v36, %v504_v43 }
 0x15d   : > { %v509_v47 = vsel %vm508_vm8, %v2755_v36, %v505_v46 }
 0x15e   : > { %v511_v48 = vmul.f32 %v509_v47, %v477_v20 }
 0x160   : > { %v514_v51 = vmul.f32 %v512_v45, %v511_v48 }
 0x162   : > { %v517_v53 = vadd.f32 %v515_v50, %v514_v51 }
 0x164   : > { %v518_v54 = vpack.c.bf16 %v517_v53, %v516_v52 }
 0x166   : > { %2530 = vmatmul.msk.bf16.vlgmr.msra.gmra.mxu0 %vm460_vm1, %v518_v54 }
 0x1e3   : > { %v547_v55 = vpop.f32.mrf.mxu0 }
 0x1e4   : > { %578 = vrot.lane.b32.xlu1 %v547_v55, %s2994_s5  ;;  %560 = vrot.lane.b32.xlu0 %v547_v55, %s2995_s28  ;;  %v623_v4 = vrot.slane %v547_v55, 4 }
 0x1e5   : > { %566 = vrot.lane.b32.xlu2 %v547_v55, %s2996_s9 }
 0x1eb   : > { %v3238_v56 = vpop.f32.mrf.mxu0 }
 0x1ec   : > { %562 = vrot.lane.b32.xlu1 %v3238_v56, %s2995_s28  ;;  %568 = vrot.lane.b32.xlu0 %v3238_v56, %s2996_s9  ;;  %v3246_v57 = vpack.i.bf16 %v3238_v56, %v547_v55  ;;  %v791_v38 = vrot.slane %v3238_v56, 4 }
 0x1ed   : > { %554 = vrot.lane.b32.xlu2 %v547_v55, %s2997_s15 }
 0x1f4   : > { %574 = vrot.lane.b32.xlu1 %v3238_v56, %s2998_s26  ;;  %580 = vrot.lane.b32.xlu0 %v3238_v56, %s2994_s5 }
 0x1f5   : > { %590 = vrot.lane.b32.xlu2 %v547_v55, %s2999_s16 }
 0x1fc   : > { %586 = vrot.lane.b32.xlu0 %v3238_v56, %s3000_s17 }
 0x1fd   : > { %572 = vrot.lane.b32.xlu2 %v547_v55, %s2998_s26 }
 0x204   : > { %2730 = vrot.lane.b32.xlu0 %v3246_v57, %s3001_s14 }
 0x205   : > { %584 = vrot.lane.b32.xlu2 %v547_v55, %s3000_s17 }
 0x20d   : > { %556 = vrot.lane.b32.xlu2 %v3238_v56, %s2997_s15 }
 0x215   : > { %592 = vrot.lane.b32.xlu2 %v3238_v56, %s2999_s16 }
 0x23f   : > { %v567_v58 = vpop.permute.xlu2 %566 }
 0x240   : > { %v633_v0 = vrot.slane %v567_v58, 4 }
 0x247   : > { %v555_v59 = vpop.permute.xlu2 %554 }
 0x248   : > { %v635_v60 = vrot.slane %v555_v59, 4  ;;  %v634_v3 = vsel %vm621_vm9, %v633_v0, %v555_v59 }
 0x249   : > { %v640_v15 = vperm.slane %v634_v3, %v3252_v2 }
 0x24a   : > { %v636_v1 = vsel %vm621_vm9, %v567_v58, %v635_v60 }
 0x24b   : > { %v644_v5 = vperm.slane %v636_v1, %v3252_v2  ;;  %v669_v25 = vrot.slane %v640_v15, 4 }
 0x24d   : > { %v681_v20 = vrot.slane %v644_v5, 4 }
 0x24f   : > { %v591_v61 = vpop.permute.xlu2 %590 }
 0x250   : > { %v657_v17 = vrot.slane %v591_v61, 4 }
 0x256   : > { %v579_v6 = vpop.permute.xlu1 %578  ;;  %v561_v7 = vpop.permute.xlu0 %560 }
 0x257   : > { %v659_v8 = vrot.slane %v579_v6, 4  ;;  %v620_v11 = vrot.slane %v561_v7, 4  ;;  %v624_v13 = vsel %vm621_vm9, %v561_v7, %v623_v4  ;;  %v573_v14 = vpop.permute.xlu2 %572  ;;  %v658_v22 = vsel %vm621_vm9, %v657_v17, %v579_v6 }
 0x258   : > { %v632_v16 = vperm.slane %v624_v13, %v3252_v2  ;;  %v664_v29 = vperm.slane %v658_v22, %v3252_v2  ;;  %v647_v31 = vrot.slane %v573_v14, 4 }
 0x259   : > { %v660_v18 = vsel %vm621_vm9, %v591_v61, %v659_v8  ;;  %v622_v19 = vsel %vm621_vm9, %v620_v11, %v547_v55 }
 0x25a   : > { %v628_v21 = vperm.slane %v622_v19, %v3252_v2  ;;  %v683_v24 = vrot.slane %v632_v16, 4  ;;  %v668_v26 = vperm.slane %v660_v18, %v3252_v2  ;;  %v682_v28 = vsel %vm621_vm9, %v681_v20, %v632_v16 }
 0x25b   : > { %v688_v35 = vperm.slane %v682_v28, %v3263_v23  ;;  %v693_v47 = vrot.slane %v664_v29, 4 }
 0x25c   : > { %v671_v27 = vrot.slane %v628_v21, 4  ;;  %v670_v30 = vsel %vm621_vm9, %v669_v25, %v628_v21  ;;  %v684_v34 = vsel %vm621_vm9, %v644_v5, %v683_v24  ;;  %v705_v39 = vrot.slane %v668_v26, 4 }
 0x25d   : > { %v676_v43 = vperm.slane %v670_v30, %v3263_v23  ;;  %v692_v48 = vperm.slane %v684_v34, %v3263_v23  ;;  %v727_v54 = vrot.slane %v688_v35, 4 }
 0x25e   : > { %v563_v32 = vpop.permute.xlu1 %562  ;;  %v569_v33 = vpop.permute.xlu0 %568  ;;  %v672_v40 = vsel %vm621_vm9, %v640_v15, %v671_v27 }
 0x25f   : > { %v585_v36 = vpop.permute.xlu2 %584  ;;  %v789_v37 = vrot.slane %v563_v32, 4  ;;  %v792_v46 = vsel %vm621_vm9, %v563_v32, %v791_v38  ;;  %v680_v50 = vperm.slane %v672_v40, %v3263_v23  ;;  %v719_v59 = vrot.slane %v676_v43, 4 }
 0x260   : > { %v645_v41 = vrot.slane %v585_v36, 4  ;;  %v648_v42 = vsel %vm621_vm9, %v585_v36, %v647_v31  ;;  %v731_v63 = vrot.slane %v692_v48, 4  ;;  %v801_v8 = vrot.slane %v569_v33, 4 }
 0x261   : > { %v656_v44 = vperm.slane %v648_v42, %v3252_v2  ;;  %v790_v45 = vsel %vm621_vm9, %v789_v37, %v3238_v56  ;;  %v800_v56 = vperm.slane %v792_v46, %v3252_v2  ;;  %v723_v5 = vrot.slane %v680_v50, 4 }
 0x262   : > { %v646_v49 = vsel %vm621_vm9, %v645_v41, %v573_v14  ;;  %v796_v58 = vperm.slane %v790_v45, %v3252_v2 }
 0x263   : > { %v652_v51 = vperm.slane %v646_v49, %v3252_v2  ;;  %v706_v52 = vsel %vm621_vm9, %v705_v39, %v656_v44  ;;  %v707_v53 = vrot.slane %v656_v44, 4  ;;  %v851_v14 = vrot.slane %v800_v56, 4 }
 0x264   : > { %v712_v55 = vperm.slane %v706_v52, %v3263_v23  ;;  %v839_v13 = vrot.slane %v796_v58, 4 }
 0x265   : > { %v694_v60 = vsel %vm621_vm9, %v693_v47, %v652_v51  ;;  %v695_v61 = vrot.slane %v652_v51, 4  ;;  %v708_v62 = vsel %vm621_vm9, %v668_v26, %v707_v53 }
 0x266   : > { %v700_v0 = vperm.slane %v694_v60, %v3263_v23  ;;  %v716_v1 = vperm.slane %v708_v62, %v3263_v23  ;;  %v3292_v3 = vsel %vm621_vm9, %v712_v55, %v727_v54  ;;  %v581_v4 = vpop.permute.xlu0 %580  ;;  %v725_v7 = vrot.slane %v712_v55, 4  ;;  %v575_v15 = vpop.permute.xlu1 %574 }
 0x267   : > { %v696_v6 = vsel %vm621_vm9, %v664_v29, %v695_v61  ;;  %v557_v9 = vpop.permute.xlu2 %556  ;;  %v995_v11 = vrot.slane %v3292_v3, 4  ;;  %v815_v27 = vrot.slane %v575_v15, 4  ;;  %v827_v32 = vrot.slane %v581_v4, 4 }
 0x268   : > { %v704_v10 = vperm.slane %v696_v6, %v3263_v23  ;;  %v717_v16 = vrot.slane %v700_v0, 4  ;;  %v3298_v17 = vsel %vm621_vm9, %v700_v0, %v719_v59  ;;  %v729_v18 = vrot.slane %v716_v1, 4 }
 0x269   : > { %v732_v19 = vsel %vm621_vm9, %v716_v1, %v731_v63  ;;  %v802_v22 = vsel %vm621_vm9, %v801_v8, %v557_v9  ;;  %v803_v24 = vrot.slane %v557_v9, 4  ;;  %v726_v25 = vsel %vm621_vm9, %v725_v7, %v688_v35 }
 0x26a   : > { %v721_v20 = vrot.slane %v704_v10, 4  ;;  %v993_v21 = vrot.slane %v732_v19, 4  ;;  %v730_v26 = vsel %vm621_vm9, %v729_v18, %v692_v48  ;;  %v808_v28 = vperm.slane %v802_v22, %v3252_v2 }
 0x26b   : > { %v981_v29 = vrot.slane %v730_v26, 4  ;;  %v804_v31 = vsel %vm621_vm9, %v569_v33, %v803_v24  ;;  %v971_v34 = vrot.slane %v3298_v17, 4  ;;  %v3311_v38 = vsel %vm621_vm9, %v717_v16, %v676_v43 }
 0x26c   : > { %v994_v30 = vsel %vm621_vm9, %v993_v21, %v3292_v3  ;;  %v812_v36 = vperm.slane %v804_v31, %v3252_v2  ;;  %v837_v37 = vrot.slane %v808_v28, 4  ;;  %v983_v35 = vrot.slane %v726_v25, 4 }
 0x26d   : > { %v3314_v39 = vperm.slane %v994_v30, %v3252_v2  ;;  %v3317_v41 = vsel %vm621_vm9, %v721_v20, %v680_v50  ;;  %v3320_v42 = vsel %vm621_vm9, %v704_v10, %v723_v5  ;;  %v840_v44 = vsel %vm621_vm9, %v808_v28, %v839_v13 }
 0x26e   : > { %v587_v40 = vpop.permute.xlu0 %586  ;;  %v838_v33 = vsel %vm621_vm9, %v837_v37, %v796_v58  ;;  %v849_v45 = vrot.slane %v812_v36, 4  ;;  %v3325_v43 = vsel %vm621_vm9, %v981_v29, %v726_v25  ;;  %v852_v48 = vsel %vm621_vm9, %v812_v36, %v851_v14 }
 0x26f   : > { %v593_v46 = vpop.permute.xlu2 %592  ;;  %v813_v47 = vrot.slane %v587_v40, 4  ;;  %v959_v51 = vrot.slane %v3311_v38, 4  ;;  %v816_v54 = vsel %vm621_vm9, %v587_v40, %v815_v27  ;;  %v3334_v55 = vperm.slane %v838_v33, %v3263_v23 }
 0x270   : > { %v825_v49 = vrot.slane %v593_v46, 4  ;;  %v850_v50 = vsel %vm621_vm9, %v849_v45, %v800_v56  ;;  %v828_v52 = vsel %vm621_vm9, %v593_v46, %v827_v32  ;;  %v3337_v58 = vperm.slane %v840_v44, %v3263_v23 }
 0x271   : > { %v814_v53 = vsel %vm621_vm9, %v813_v47, %v575_v15  ;;  %v957_v60 = vrot.slane %v3317_v41, 4  ;;  %v836_v56 = vperm.slane %v828_v52, %v3252_v2  ;;  %v824_v63 = vperm.slane %v816_v54, %v3252_v2 }
 0x272   : > { %v826_v59 = vsel %vm621_vm9, %v825_v49, %v581_v4  ;;  %v820_v62 = vperm.slane %v814_v53, %v3252_v2  ;;  %v856_v0 = vperm.slane %v850_v50, %v3263_v23  ;;  %v860_v1 = vperm.slane %v852_v48, %v3263_v23 }
 0x273   : > { %v832_v61 = vperm.slane %v826_v59, %v3252_v2  ;;  %v960_v3 = vsel %vm621_vm9, %v3317_v41, %v959_v51  ;;  %v972_v4 = vsel %vm621_vm9, %v3320_v42, %v971_v34  ;;  %v873_v6 = vrot.slane %v836_v56, 4 }
 0x274   : > { %v863_v7 = vrot.slane %v820_v62, 4  ;;  %v875_v8 = vrot.slane %v824_v63, 4  ;;  %v891_v9 = vrot.slane %v3337_v58, 4  ;;  %v968_v10 = vperm.slane %v960_v3, %v3252_v2 }
 0x275   : > { %v861_v5 = vrot.slane %v832_v61, 4  ;;  %v980_v13 = vperm.slane %v972_v4, %v3252_v2  ;;  %v996_v14 = vsel %vm621_vm9, %v732_v19, %v995_v11  ;;  %v874_v18 = vsel %vm621_vm9, %v873_v6, %v824_v63 }
 0x276   : > { %v864_v16 = vsel %vm621_vm9, %v832_v61, %v863_v7  ;;  %v876_v20 = vsel %vm621_vm9, %v836_v56, %v875_v8  ;;  %v880_v22 = vperm.slane %v874_v18, %v3263_v23  ;;  %v984_v25 = vsel %vm621_vm9, %v730_v26, %v983_v35 }
 0x277   : > { %v862_v15 = vsel %vm621_vm9, %v861_v5, %v820_v62  ;;  %v884_v24 = vperm.slane %v876_v20, %v3263_v23  ;;  %v895_v27 = vrot.slane %v856_v0, 4  ;;  %v899_v28 = vrot.slane %v860_v1, 4 }
 0x278   : > { %v3360_v21 = vperm.slane %v862_v15, %v3263_v23  ;;  %v1004_v11 = vperm.slane %v996_v14, %v3252_v2  ;;  %v1017_v19 = vrot.slane %v980_v13, 4  ;;  %v887_v29 = vrot.slane %v3334_v55, 4 }
 0x279   : > { %v3368_v30 = vperm.slane %v864_v16, %v3263_v23  ;;  %v893_v31 = vrot.slane %v880_v22, 4  ;;  %v969_v32 = vrot.slane %v3320_v42, 4  ;;  %v896_v34 = vsel %vm621_vm9, %v880_v22, %v895_v27 }
 0x27a   : > { %v897_v36 = vrot.slane %v884_v24, 4  ;;  %v900_v37 = vsel %vm621_vm9, %v884_v24, %v899_v28  ;;  %v992_v26 = vperm.slane %v984_v25, %v3252_v2  ;;  %v885_v35 = vrot.slane %v3360_v21, 4 }
 0x27b   : > { %v3377_v40 = vsel %vm621_vm9, %v3360_v21, %v887_v29  ;;  %v1159_v41 = vrot.slane %v900_v37, 4  ;;  %v1018_v33 = vsel %vm621_vm9, %v1017_v19, %v968_v10  ;;  %v1161_v42 = vrot.slane %v896_v34, 4 }
 0x27c   : > { %v3381_v44 = vsel %vm621_vm9, %v897_v36, %v860_v1  ;;  %v1024_v45 = vperm.slane %v1018_v33, %v3263_v23  ;;  %v1041_v46 = vrot.slane %v1004_v11, 4  ;;  %v889_v47 = vrot.slane %v3368_v30, 4 }
 0x27d   : > { %v3386_v48 = vsel %vm621_vm9, %v893_v31, %v856_v0  ;;  %v1147_v49 = vrot.slane %v3381_v44, 4  ;;  %v1160_v51 = vsel %vm621_vm9, %v1159_v41, %v896_v34  ;;  %v1137_v50 = vrot.slane %v3377_v40, 4 }
 0x27e   : > { %v3392_v52 = vperm.slane %v1160_v51, %v3252_v2  ;;  %v1042_v53 = vsel %vm621_vm9, %v1041_v46, %v992_v26  ;;  %v1063_v54 = vrot.slane %v1024_v45, 4  ;;  %v1019_v56 = vrot.slane %v968_v10, 4 }
 0x27f   : > { %v1148_v59 = vsel %vm621_vm9, %v1147_v49, %v3386_v48  ;;  %v1048_v61 = vperm.slane %v1042_v53, %v3263_v23  ;;  %v1043_v62 = vrot.slane %v992_v26, 4  ;;  %v1149_v63 = vrot.slane %v3386_v48, 4 }
 0x280   : > { %v3400_v0 = vperm.slane %v1148_v59, %v3252_v2  ;;  %v3403_v1 = vsel %vm621_vm9, %v900_v37, %v1161_v42  ;;  %v958_v3 = vsel %vm621_vm9, %v957_v60, %v3311_v38  ;;  %v1020_v6 = vsel %vm621_vm9, %v980_v13, %v1019_v56 }
 0x281   : > { %v1061_v4 = vrot.slane %v1048_v61, 4  ;;  %v1064_v5 = vsel %vm621_vm9, %v1048_v61, %v1063_v54  ;;  %v1044_v7 = vsel %vm621_vm9, %v1004_v11, %v1043_v62  ;;  %v1195_v8 = vrot.slane %v3392_v52, 4 }
 0x282   : > { %v1306_v10 = vpack.c.bf16 %v1064_v5, %v1064_v5  ;;  %v1028_v14 = vperm.slane %v1020_v6, %v3263_v23  ;;  %v1052_v15 = vperm.slane %v1044_v7, %v3263_v23  ;;  %v964_v18 = vperm.slane %v958_v3, %v3252_v2 }
 0x283   : > { %v1062_v16 = vsel %vm621_vm9, %v1061_v4, %v1024_v45  ;;  %v970_v38 = vsel %vm621_vm9, %v969_v32, %v3298_v17  ;;  %v988_v60 = vperm.slane %v3325_v43, %v3252_v2  ;;  %v1029_v25 = vrot.slane %v3314_v39, 4 }
 0x284   : > { %v1305_v13 = vpack.c.bf16 %v1062_v16, %v1062_v16  ;;  %v1345_v20 = vsel %vm1321_vm10, %v1306_v10, 0  ;;  %v1065_v21 = vrot.slane %v1052_v15, 4  ;;  %v1067_v22 = vrot.slane %v1028_v14, 4 }
 0x285   : > { %1354 = vmatpush.bf16.xpose.msra.mxu2 %v1345_v20  ;;  %v976_v24 = vperm.slane %v970_v38, %v3252_v2  ;;  %v1007_v27 = vrot.slane %v964_v18, 4  ;;  %v1031_v28 = vrot.slane %v988_v60, 4  ;;  %v886_v43 = vsel %vm621_vm9, %v885_v35, %v3334_v55 }
 0x286   : > { %v1326_v11 = vsel %vm1321_vm10, %v1305_v13, 0  ;;  %v1066_v19 = vsel %vm621_vm9, %v1065_v21, %v1028_v14  ;;  %v1068_v17 = vsel %vm621_vm9, %v1052_v15, %v1067_v22  ;;  %v1030_v34 = vsel %vm621_vm9, %v1029_v25, %v988_v60 }
 0x287   : > { %1335 = vmatpush.bf16.xpose.msra.mxu1 %v1326_v11  ;;  %v1307_v29 = vpack.c.bf16 %v1066_v19, %v1066_v19  ;;  %v1308_v31 = vpack.c.bf16 %v1068_v17, %v1068_v17  ;;  %v1005_v32 = vrot.slane %v976_v24, 4  ;;  %v1036_v36 = vperm.slane %v1030_v34, %v3263_v23 }
 0x288   : > { %v1008_v37 = vsel %vm621_vm9, %v976_v24, %v1007_v27  ;;  %v1032_v26 = vsel %vm621_vm9, %v3314_v39, %v1031_v28  ;;  %v890_v41 = vsel %vm621_vm9, %v889_v47, %v3337_v58  ;;  %v892_v39 = vsel %vm621_vm9, %v3368_v30, %v891_v9 }
 0x289   : > { %v1364_v33 = vsel %vm1321_vm10, %v1307_v29, 0  ;;  %v1383_v55 = vsel %vm1321_vm10, %v1308_v31, 0  ;;  %v1006_v35 = vsel %vm621_vm9, %v1005_v32, %v964_v18  ;;  %v1016_v42 = vperm.slane %v1008_v37, %v3263_v23 }
 0x28a   : > { %1373 = vmatpush.bf16.xpose.msra.mxu3 %v1364_v33  ;;  %1392 = vmatpush.bf16.xpose.msrb.mxu0 %v1383_v55  ;;  %v1012_v45 = vperm.slane %v1006_v35, %v3263_v23  ;;  %v1053_v46 = vrot.slane %v1036_v36, 4  ;;  %v1040_v49 = vperm.slane %v1032_v26, %v3263_v23  ;;  %v1123_v51 = vrot.slane %v890_v41, 4 }
 0x28b   : > { %v1059_v47 = vrot.slane %v1016_v42, 4  ;;  %v1125_v53 = vrot.slane %v886_v43, 4  ;;  %v1135_v54 = vrot.slane %v892_v39, 4  ;;  %v1138_v62 = vsel %vm621_vm9, %v892_v39, %v1137_v50 }
 0x28c   : > { %v1054_v59 = vsel %vm621_vm9, %v1053_v46, %v1012_v45  ;;  %v1055_v61 = vrot.slane %v1012_v45, 4  ;;  %v1057_v56 = vrot.slane %v1040_v49, 4  ;;  %v1146_v5 = vperm.slane %v1138_v62, %v3252_v2 }
 0x28d   : > { %v1289_v3 = vmul.f32 0.35355338, %v1054_v59  ;;  %v1060_v4 = vsel %vm621_vm9, %v1040_v49, %v1059_v47  ;;  %v1126_v58 = vsel %vm621_vm9, %v890_v41, %v1125_v53  ;;  %v1150_v50 = vsel %vm621_vm9, %v3381_v44, %v1149_v63 }
 0x28e   : > { %v1056_v9 = vsel %vm621_vm9, %v1036_v36, %v1055_v61  ;;  %v1058_v30 = vsel %vm621_vm9, %v1057_v56, %v1016_v42  ;;  %v1292_v6 = vmul.f32 0.35355338, %v1060_v4  ;;  %v1134_v7 = vperm.slane %v1126_v58, %v3252_v2 }
 0x28f   : > { %v1297_v10 = vpack.c.bf16 %v1289_v3, %v1289_v3  ;;  %v1290_v14 = vmul.f32 0.35355338, %v1056_v9  ;;  %v1291_v15 = vmul.f32 0.35355338, %v1058_v30  ;;  %v1158_v18 = vperm.slane %v1150_v50, %v3252_v2 }
 0x290   : > { %v1300_v16 = vpack.c.bf16 %v1292_v6, %v1292_v6  ;;  %v1170_v38 = vperm.slane %v3403_v1, %v3252_v2  ;;  %v1183_v60 = vrot.slane %v1146_v5, 4  ;;  %v1185_v21 = vrot.slane %v1134_v7, 4 }
 0x291   : > { %2531 = vmatmul.msk.bf16.vlgmr.msra.gmra.mxu1 %vm1321_vm10, %v1297_v10  ;;  %v1298_v13 = vpack.c.bf16 %v1290_v14, %v1290_v14  ;;  %v1299_v20 = vpack.c.bf16 %v1291_v15, %v1291_v15  ;;  %v1124_v22 = vsel %vm621_vm9, %v1123_v51, %v886_v43  ;;  %v1209_v44 = vrot.slane %v1158_v18, 4 }
 0x292   : > { %2534 = vmatmul.msk.bf16.vlgmr.msrb.gmra.mxu0 %vm1321_vm10, %v1300_v16  ;;  %v1184_v48 = vsel %vm621_vm9, %v1183_v60, %v1134_v7  ;;  %v1207_v24 = vrot.slane %v1170_v38, 4  ;;  %v1130_v63 = vperm.slane %v1124_v22, %v3252_v2  ;;  %v1197_v25 = vrot.slane %v3400_v0, 4 }
 0x293   : > { %2532 = vmatmul.msk.bf16.vlgmr.msra.gmra.mxu2 %vm1321_vm10, %v1298_v13  ;;  %2533 = vmatmul.msk.bf16.vlgmr.msra.gmra.mxu3 %vm1321_vm10, %v1299_v20  ;;  %v1190_v1 = vperm.slane %v1184_v48, %v3263_v23  ;;  %v1186_v27 = vsel %vm621_vm9, %v1146_v5, %v1185_v21  ;;  %v1136_v28 = vsel %vm621_vm9, %v1135_v54, %v3377_v40 }
 0x294   : > { %v1208_v11 = vsel %vm621_vm9, %v1207_v24, %v1158_v18  ;;  %v1194_v19 = vperm.slane %v1186_v27, %v3263_v23  ;;  %v1210_v17 = vsel %vm621_vm9, %v1170_v38, %v1209_v44  ;;  %v1142_v43 = vperm.slane %v1136_v28, %v3252_v2 }
 0x295   : > { %v1214_v29 = vperm.slane %v1208_v11, %v3263_v23  ;;  %v1229_v31 = vrot.slane %v1190_v1, 4  ;;  %v1218_v32 = vperm.slane %v1210_v17, %v3263_v23  ;;  %v1196_v34 = vsel %vm621_vm9, %v1195_v8, %v3400_v0 }
 0x296   : > { %v1233_v36 = vrot.slane %v1194_v19, 4  ;;  %v1171_v40 = vrot.slane %v1142_v43, 4  ;;  %v1202_v37 = vperm.slane %v1196_v34, %v3263_v23  ;;  %v1173_v26 = vrot.slane %v1130_v63, 4 }
 0x297   : > { %v1227_v41 = vrot.slane %v1214_v29, 4  ;;  %v1230_v33 = vsel %vm621_vm9, %v1214_v29, %v1229_v31  ;;  %v1231_v55 = vrot.slane %v1218_v32, 4  ;;  %v1198_v35 = vsel %vm621_vm9, %v3392_v52, %v1197_v25 }
 0x298   : > { %v1310_v42 = vpack.c.bf16 %v1230_v33, %v1230_v33  ;;  %v1234_v45 = vsel %vm621_vm9, %v1218_v32, %v1233_v36  ;;  %v1172_v46 = vsel %vm621_vm9, %v1171_v40, %v1130_v63  ;;  %v1219_v49 = vrot.slane %v1202_v37, 4 }
 0x299   : > { %v1228_v0 = vsel %vm621_vm9, %v1227_v41, %v1190_v1  ;;  %v1232_v8 = vsel %vm621_vm9, %v1231_v55, %v1194_v19  ;;  %v1312_v39 = vpack.c.bf16 %v1234_v45, %v1234_v45  ;;  %v1178_v47 = vperm.slane %v1172_v46, %v3263_v23  ;;  %v3521_v41 = vpop.permute.xlu0 %2730 }
 0x29a   : > { %v1309_v51 = vpack.c.bf16 %v1228_v0, %v1228_v0  ;;  %v1421_v53 = vsel %vm1321_vm10, %v1310_v42, 0  ;;  %v1311_v54 = vpack.c.bf16 %v1232_v8, %v1232_v8  ;;  %v1174_v59 = vsel %vm621_vm9, %v1142_v43, %v1173_v26 }
 0x29b   : > { %1430 = vmatpush.bf16.xpose.msrb.mxu2 %v1421_v53  ;;  %v1459_v52 = vsel %vm1321_vm10, %v1312_v39, 0  ;;  %v1220_v61 = vsel %vm621_vm9, %v1219_v49, %v1178_v47  ;;  %v1221_v56 = vrot.slane %v1178_v47, 4  ;;  %v1182_v62 = vperm.slane %v1174_v59, %v3263_v23 }
 0x29c   : > { %v1402_v3 = vsel %vm1321_vm10, %v1309_v51, 0  ;;  %v1440_v4 = vsel %vm1321_vm10, %v1311_v54, 0  ;;  %1468 = vmatpush.bf16.xpose.msra.mxu0 %v1459_v52  ;;  %v1206_v58 = vperm.slane %v1198_v35, %v3263_v23  ;;  %v1293_v30 = vmul.f32 0.35355338, %v1220_v61 }
 0x29d   : > { %1411 = vmatpush.bf16.xpose.msrb.mxu1 %v1402_v3  ;;  %1449 = vmatpush.bf16.xpose.msrb.mxu3 %v1440_v4  ;;  %v1222_v5 = vsel %vm621_vm9, %v1202_v37, %v1221_v56  ;;  %v1225_v9 = vrot.slane %v1182_v62, 4 }
 0x29e   : > { %v1294_v6 = vmul.f32 0.35355338, %v1222_v5  ;;  %v1223_v7 = vrot.slane %v1206_v58, 4  ;;  %v1301_v18 = vpack.c.bf16 %v1293_v30, %v1293_v30 }
 0x29f   : > { %v1226_v10 = vsel %vm621_vm9, %v1206_v58, %v1225_v9 }
 0x2a0   : > { %v1224_v14 = vsel %vm621_vm9, %v1223_v7, %v1182_v62  ;;  %v1296_v15 = vmul.f32 0.35355338, %v1226_v10  ;;  %v1302_v50 = vpack.c.bf16 %v1294_v6, %v1294_v6 }
 0x2a1   : > { %v1295_v16 = vmul.f32 0.35355338, %v1224_v14 }
 0x2a2   : > { %v1304_v38 = vpack.c.bf16 %v1296_v15, %v1296_v15 }
 0x2a3   : > { %2536 = vmatmul.msk.bf16.vlgmr.msrb.gmra.mxu2 %vm1321_vm10, %v1302_v50  ;;  %v1303_v60 = vpack.c.bf16 %v1295_v16, %v1295_v16 }
 0x2a4   : > { %2535 = vmatmul.msk.bf16.vlgmr.msrb.gmra.mxu1 %vm1321_vm10, %v1301_v18  ;;  %2538 = vmatmul.msk.bf16.vlgmr.msra.gmra.mxu0 %vm1321_vm10, %v1304_v38 }
 0x2a5   : > { %2537 = vmatmul.msk.bf16.vlgmr.msrb.gmra.mxu3 %vm1321_vm10, %v1303_v60 }
 0x30e   : > { %v1337_v13 = vpop.f32.mrf.mxu1 }
 0x30f   : > { %v1474_v20 = vsel %vm1321_vm10, %v1337_v13, -inf  ;;  %v1394_v21 = vpop.f32.mrf.mxu0 }
 0x310   : > { %1475 = vmax.xlane.f32.xlu0 %v1474_v20  ;;  %v1483_v22 = vsel %vm1321_vm10, %v1394_v21, -inf }
 0x311   : > { %1484 = vmax.xlane.f32.xlu2 %v1483_v22 }
 0x316   : > { %v1339_v48 = vpop.f32.mrf.mxu1  ;;  %v1356_v24 = vpop.f32.mrf.mxu2 }
 0x317   : > { %v1375_v44 = vpop.f32.mrf.mxu3  ;;  %v1396_v63 = vpop.f32.mrf.mxu0  ;;  %v1477_v1 = vsel %vm1321_vm10, %v1356_v24, -inf  ;;  %v2732_v48 = vunpack.i.l.bf16 %v3521_v41 }
 0x318   : > { %v1480_v25 = vsel %vm1321_vm10, %v1375_v44, -inf }
 0x319   : > { %1481 = vmax.xlane.f32.xlu1 %v1480_v25  ;;  %1478 = vmax.xlane.f32.xlu2 %v1477_v1  ;;  %v733_v1 = vrot.slane %v2732_v48, 4 }
 0x31e   : > { %v1358_v27 = vpop.f32.mrf.mxu2 }
 0x31f   : > { %v1377_v28 = vpop.f32.mrf.mxu3 }
 0x321   : > { %v1413_v11 = vpop.f32.mrf.mxu1  ;;  %v3511_v19 = vpop.f32.mrf.mxu0 }
 0x322   : > { %v1486_v17 = vsel %vm1321_vm10, %v1413_v11, -inf  ;;  %v1495_v43 = vsel %vm1321_vm10, %v3511_v19, -inf }
 0x323   : > { %1487 = vmax.xlane.f32.xlu2 %v1486_v17  ;;  %1496 = vmax.xlane.f32.xlu1 %v1495_v43 }
 0x326   : > { %v1432_v29 = vpop.f32.mrf.mxu2 }
 0x327   : > { %v1489_v40 = vsel %vm1321_vm10, %v1432_v29, -inf }
 0x328   : > { %v1451_v31 = vpop.f32.mrf.mxu3 }
 0x329   : > { %v1415_v32 = vpop.f32.mrf.mxu1  ;;  %v1492_v34 = vsel %vm1321_vm10, %v1451_v31, -inf  ;;  %v1472_v36 = vpop.f32.mrf.mxu0 }
 0x32a   : > { %1493 = vmax.xlane.f32.xlu0 %v1492_v34 }
 0x32b   : > { %1490 = vmax.xlane.f32.xlu1 %v1489_v40 }
 0x32e   : > { %v1434_v37 = vpop.f32.mrf.mxu2 }
 0x330   : > { %v1453_v26 = vpop.f32.mrf.mxu3 }
 0x33b   : > { %2735 = vrot.lane.b32.xlu2 %v3246_v57, %s3004_s20 }
 0x33e   : > { %2745 = vrot.lane.b32.xlu0 %v3246_v57, %s3005_s18 }
 0x344   : > { %2740 = vrot.lane.b32.xlu1 %v3246_v57, %s3006_s2 }
 0x383   : > { %v1476_v33 = vpop.xlane.xlu0 %1475 }
 0x384   : > { %v1498_v55 = vsub.f32 %v1337_v13, %v1476_v33  ;;  %v1485_v35 = vpop.xlane.xlu2 %1484 }
 0x385   : > { %v1501_v53 = vsub.f32 %v1394_v21, %v1485_v35 }
 0x386   : > { %v1506_v42 = vmul.f32 1.442695, %v1498_v55 }
 0x387   : > { %v1512_v57 = vmul.f32 1.442695, %v1501_v53 }
 0x388   : > { %2756 = vpow2.f32 %v1506_v42 }
 0x38c   : > { %v1482_v45 = vpop.xlane.xlu1 %1481  ;;  %v1479_v46 = vpop.xlane.xlu2 %1478 }
 0x38d   : > { %v1500_v49 = vsub.f32 %v1375_v44, %v1482_v45  ;;  %v1499_v0 = vsub.f32 %v1356_v24, %v1479_v46  ;;  %v2733_v44 = vunpack.i.h.bf16 %v3521_v41 }
 0x38e   : > { %v3523_v8 = vpop.eup %2756 }
 0x38f   : > { %v1510_v39 = vmul.f32 1.442695, %v1500_v49  ;;  %v1508_v47 = vmul.f32 1.442695, %v1499_v0  ;;  %v1522_v51 = vsel %vm1321_vm10, %v3523_v8, 0.0 }
 0x390   : > { %1523 = vadd.xlane.f32.xlu1 %v1522_v51 }
 0x391   : > { %2758 = vpow2.f32 %v1510_v39 }
 0x392   : > { %2760 = vpow2.f32 %v1508_v47 }
 0x393   : > { %2762 = vpow2.f32 %v1512_v57 }
 0x396   : > { %v1488_v54 = vpop.xlane.xlu2 %1487  ;;  %v1497_v59 = vpop.xlane.xlu1 %1496 }
 0x397   : > { %v3527_v52 = vpop.eup %2758  ;;  %v1502_v56 = vsub.f32 %v1413_v11, %v1488_v54  ;;  %v1505_v15 = vsub.f32 %v3511_v19, %v1497_v59  ;;  %v901_v11 = vrot.slane %v2733_v44, 4 }
 0x398   : > { %v3529_v61 = vpop.eup %2760  ;;  %v1528_v62 = vsel %vm1321_vm10, %v3527_v52, 0.0 }
 0x399   : > { %1529 = vadd.xlane.f32.xlu0 %v1528_v62  ;;  %v1525_v3 = vsel %vm1321_vm10, %v3529_v61, 0.0  ;;  %v1514_v4 = vmul.f32 1.442695, %v1502_v56  ;;  %v3535_v5 = vpop.eup %2762  ;;  %v1520_v16 = vmul.f32 1.442695, %v1505_v15 }
 0x39a   : > { %1526 = vadd.xlane.f32.xlu2 %v1525_v3  ;;  %v1531_v10 = vsel %vm1321_vm10, %v3535_v5, 0.0 }
 0x39b   : > { %2764 = vpow2.f32 %v1514_v4 }
 0x39d   : > { %v1494_v58 = vpop.xlane.xlu0 %1493 }
 0x39e   : > { %v1504_v9 = vsub.f32 %v1451_v31, %v1494_v58  ;;  %v1491_v30 = vpop.xlane.xlu1 %1490  ;;  %v2736_v38 = vpop.permute.xlu2 %2735 }
 0x39f   : > { %v1503_v6 = vsub.f32 %v1432_v29, %v1491_v30  ;;  %v2738_v21 = vunpack.i.h.bf16 %v2736_v38  ;;  %v2737_v22 = vunpack.i.l.bf16 %v2736_v38 }
 0x3a0   : > { %v1518_v7 = vmul.f32 1.442695, %v1504_v9 }
 0x3a1   : > { %v1516_v14 = vmul.f32 1.442695, %v1503_v6  ;;  %v3540_v50 = vpop.eup %2764  ;;  %v903_v63 = vrot.slane %v2738_v21, 4  ;;  %v735_v25 = vrot.slane %v2737_v22, 4  ;;  %v734_v19 = vsel %vm621_vm9, %v733_v1, %v2737_v22 }
 0x3a2   : > { %2766 = vpow2.f32 %v1518_v7  ;;  %1532 = vadd.xlane.f32.xlu2 %v1531_v10  ;;  %v1534_v13 = vsel %vm1321_vm10, %v3540_v50, 0.0  ;;  %v902_v34 = vsel %vm621_vm9, %v901_v11, %v2738_v21  ;;  %v740_v40 = vperm.slane %v734_v19, %v3252_v2 }
 0x3a3   : > { %2768 = vpow2.f32 %v1516_v14  ;;  %v904_v17 = vsel %vm621_vm9, %v2733_v44, %v903_v63  ;;  %v736_v43 = vsel %vm621_vm9, %v2732_v48, %v735_v25  ;;  %v908_v42 = vperm.slane %v902_v34, %v3252_v2 }
 0x3a4   : > { %2770 = vpow2.f32 %v1520_v16  ;;  %v912_v36 = vperm.slane %v904_v17, %v3252_v2  ;;  %v744_v37 = vperm.slane %v736_v43, %v3252_v2  ;;  %v759_v39 = vrot.slane %v740_v40, 4 }
 0x3a5   : > { %v927_v58 = vrot.slane %v908_v42, 4 }
 0x3a6   : > { %v939_v53 = vrot.slane %v912_v36, 4  ;;  %v771_v57 = vrot.slane %v744_v37, 4 }
 0x3a8   : > { %v3542_v18 = vpop.eup %2766 }
 0x3a9   : > { %v1540_v60 = vsel %vm1321_vm10, %v3542_v18, 0.0  ;;  %v3548_v20 = vpop.eup %2768 }
 0x3aa   : > { %1541 = vadd.xlane.f32.xlu1 %v1540_v60  ;;  %1535 = vadd.xlane.f32.xlu2 %v1534_v13  ;;  %v1537_v24 = vsel %vm1321_vm10, %v3548_v20, 0.0  ;;  %v3554_v28 = vpop.eup %2770 }
 0x3ab   : > { %1538 = vadd.xlane.f32.xlu0 %v1537_v24  ;;  %v1543_v32 = vsel %vm1321_vm10, %v3554_v28, 0.0 }
 0x3b0   : > { %v2746_v27 = vpop.permute.xlu0 %2745 }
 0x3b1   : > { %v2748_v29 = vunpack.i.h.bf16 %v2746_v27  ;;  %v2747_v31 = vunpack.i.l.bf16 %v2746_v27 }
 0x3b3   : > { %1544 = vadd.xlane.f32.xlu0 %v1543_v32  ;;  %v915_v41 = vrot.slane %v2748_v29, 4  ;;  %v747_v33 = vrot.slane %v2747_v31, 4 }
 0x3b6   : > { %v2741_v26 = vpop.permute.xlu1 %2740 }
 0x3b7   : > { %v2743_v55 = vunpack.i.h.bf16 %v2741_v26  ;;  %v2742_v35 = vunpack.i.l.bf16 %v2741_v26 }
 0x3b9   : > { %v913_v45 = vrot.slane %v2743_v55, 4  ;;  %v916_v46 = vsel %vm621_vm9, %v2743_v55, %v915_v41  ;;  %v745_v49 = vrot.slane %v2742_v35, 4  ;;  %v748_v0 = vsel %vm621_vm9, %v2742_v35, %v747_v33 }
 0x3ba   : > { %v924_v47 = vperm.slane %v916_v46, %v3252_v2  ;;  %v756_v51 = vperm.slane %v748_v0, %v3252_v2 }
 0x3bb   : > { %v914_v54 = vsel %vm621_vm9, %v913_v45, %v2748_v29  ;;  %v746_v59 = vsel %vm621_vm9, %v745_v49, %v2747_v31 }
 0x3bc   : > { %v920_v56 = vperm.slane %v914_v54, %v3252_v2  ;;  %v937_v62 = vrot.slane %v924_v47, 4  ;;  %v752_v3 = vperm.slane %v746_v59, %v3252_v2  ;;  %v769_v4 = vrot.slane %v756_v51, 4 }
 0x3bd   : > { %v772_v9 = vsel %vm621_vm9, %v756_v51, %v771_v57  ;;  %v940_v30 = vsel %vm621_vm9, %v924_v47, %v939_v53 }
 0x3be   : > { %v925_v6 = vrot.slane %v920_v56, 4  ;;  %v757_v7 = vrot.slane %v752_v3, 4  ;;  %v760_v10 = vsel %vm621_vm9, %v752_v3, %v759_v39  ;;  %v770_v14 = vsel %vm621_vm9, %v769_v4, %v744_v37 }
 0x3bf   : > { %v768_v15 = vperm.slane %v760_v10, %v3263_v23  ;;  %v776_v16 = vperm.slane %v770_v14, %v3263_v23  ;;  %v780_v38 = vperm.slane %v772_v9, %v3263_v23  ;;  %v928_v60 = vsel %vm621_vm9, %v920_v56, %v927_v58 }
 0x3c0   : > { %v758_v13 = vsel %vm621_vm9, %v757_v7, %v740_v40  ;;  %v926_v21 = vsel %vm621_vm9, %v925_v6, %v908_v42  ;;  %v936_v22 = vperm.slane %v928_v60, %v3263_v23  ;;  %v938_v48 = vsel %vm621_vm9, %v937_v62, %v912_v36 }
 0x3c1   : > { %v764_v24 = vperm.slane %v758_v13, %v3263_v23  ;;  %v783_v44 = vrot.slane %v768_v15, 4  ;;  %v785_v63 = vrot.slane %v776_v16, 4  ;;  %v787_v25 = vrot.slane %v780_v38, 4 }
 0x3c2   : > { %v932_v1 = vperm.slane %v926_v21, %v3263_v23  ;;  %v944_v27 = vperm.slane %v938_v48, %v3263_v23  ;;  %v948_v11 = vperm.slane %v940_v30, %v3263_v23  ;;  %v951_v19 = vrot.slane %v936_v22, 4 }
 0x3c3   : > { %v781_v17 = vrot.slane %v764_v24, 4  ;;  %v784_v43 = vsel %vm621_vm9, 0.0, %v783_v44  ;;  %v786_v29 = vsel %vm621_vm9, 0.0, %v785_v63  ;;  %v788_v31 = vsel %vm621_vm9, 0.0, %v787_v25 }
 0x3c4   : > { %v949_v32 = vrot.slane %v932_v1, 4  ;;  %v952_v34 = vsel %vm621_vm9, 0.0, %v951_v19  ;;  %v953_v36 = vrot.slane %v944_v27, 4  ;;  %v955_v40 = vrot.slane %v948_v11, 4 }
 0x3c5   : > { %v1074_v37 = vrot.slane %v784_v43, 4  ;;  %v1080_v26 = vsel %vm621_vm9, %v787_v25, %v776_v16  ;;  %v1085_v41 = vrot.slane %v788_v31, 4  ;;  %v1240_v33 = vrot.slane %v952_v34, 4 }
 0x3c6   : > { %v954_v55 = vsel %vm621_vm9, 0.0, %v953_v36  ;;  %v956_v35 = vsel %vm621_vm9, 0.0, %v955_v40  ;;  %v1084_v42 = vperm.slane %v1080_v26, %v3252_v2  ;;  %v1246_v45 = vsel %vm621_vm9, %v955_v40, %v944_v27 }
 0x3c7   : > { %v1250_v46 = vperm.slane %v1246_v45, %v3252_v2  ;;  %v1251_v49 = vrot.slane %v956_v35, 4  ;;  %v782_v0 = vsel %vm621_vm9, 0.0, %v781_v17  ;;  %v1069_v39 = vsel %vm621_vm9, %v783_v44, %v764_v24 }
 0x3c8   : > { %v1073_v47 = vperm.slane %v1069_v39, %v3252_v2  ;;  %v1075_v51 = vsel %vm621_vm9, %v1074_v37, %v782_v0  ;;  %v1086_v53 = vsel %vm621_vm9, %v1085_v41, %v786_v29  ;;  %v1105_v57 = vrot.slane %v1084_v42, 4 }
 0x3c9   : > { %v1079_v54 = vperm.slane %v1075_v51, %v3252_v2  ;;  %v1090_v59 = vperm.slane %v1086_v53, %v3252_v2  ;;  %v950_v56 = vsel %vm621_vm9, 0.0, %v949_v32  ;;  %v1235_v62 = vsel %vm621_vm9, %v951_v19, %v932_v1 }
 0x3ca   : > { %v1093_v3 = vrot.slane %v1073_v47, 4  ;;  %v1239_v4 = vperm.slane %v1235_v62, %v3252_v2  ;;  %v1241_v58 = vsel %vm621_vm9, %v1240_v33, %v950_v56  ;;  %v1252_v9 = vsel %vm621_vm9, %v1251_v49, %v954_v55 }
 0x3cb   : > { %v1106_v30 = vsel %vm621_vm9, %v1090_v59, %v1105_v57  ;;  %v1245_v6 = vperm.slane %v1241_v58, %v3252_v2  ;;  %v1256_v7 = vperm.slane %v1252_v9, %v3252_v2  ;;  %v1271_v10 = vrot.slane %v1250_v46, 4 }
 0x3cc   : > { %v1094_v14 = vsel %vm621_vm9, %v1079_v54, %v1093_v3  ;;  %v1114_v15 = vperm.slane %v1106_v30, %v3263_v23  ;;  %v1259_v16 = vrot.slane %v1239_v4, 4  ;;  %v1091_v38 = vrot.slane %v1079_v54, 4 }
 0x3cd   : > { %v1102_v60 = vperm.slane %v1094_v14, %v3263_v23  ;;  %v1272_v13 = vsel %vm621_vm9, %v1256_v7, %v1271_v10  ;;  %v1103_v21 = vrot.slane %v1090_v59, 4  ;;  %v1257_v22 = vrot.slane %v1245_v6, 4 }
 0x3ce   : > { %v1119_v48 = vrot.slane %v1114_v15, 4  ;;  %v1260_v24 = vsel %vm621_vm9, %v1245_v6, %v1259_v16  ;;  %v1280_v44 = vperm.slane %v1272_v13, %v3263_v23  ;;  %v1092_v2 = vsel %vm621_vm9, %v1091_v38, %v1073_v47 }
 0x3cf   : > { %v1268_v63 = vperm.slane %v1260_v24, %v3263_v23  ;;  %v1098_v25 = vperm.slane %v1092_v2, %v3263_v23  ;;  %v1104_v1 = vsel %vm621_vm9, %v1103_v21, %v1084_v42  ;;  %v1121_v27 = vrot.slane %v1102_v60, 4 }
 0x3d0   : > { %v1120_v11 = vsel %vm621_vm9, %v1119_v48, %v1102_v60  ;;  %v1285_v19 = vrot.slane %v1280_v44, 4  ;;  %v1110_v17 = vperm.slane %v1104_v1, %v3263_v23  ;;  %v1258_v43 = vsel %vm621_vm9, %v1257_v22, %v1239_v4 }
 0x3d1   : > { %v1315_v29 = vpack.c.bf16 %v1120_v11, %v1120_v11  ;;  %v1122_v31 = vsel %vm621_vm9, %v1114_v15, %v1121_v27  ;;  %v1264_v32 = vperm.slane %v1258_v43, %v3263_v23  ;;  %v1269_v34 = vrot.slane %v1256_v7, 4 }
 0x3d2   : > { %v1286_v36 = vsel %vm621_vm9, %v1285_v19, %v1268_v63  ;;  %v1115_v40 = vrot.slane %v1110_v17, 4  ;;  %v1316_v37 = vpack.c.bf16 %v1122_v31, %v1122_v31  ;;  %v1287_v26 = vrot.slane %v1268_v63, 4 }
 0x3d3   : > { %v1717_v41 = vsel %vm1677_vm11, %v1315_v29, 0  ;;  %v1319_v33 = vpack.c.bf16 %v1286_v36, %v1286_v36  ;;  %v1270_v55 = vsel %vm621_vm9, %v1269_v34, %v1250_v46  ;;  %v1117_v35 = vrot.slane %v1098_v25, 4 }
 0x3d4   : > { %1726 = vmatpush.bf16.msra.mxu3 %v1717_v41  ;;  %v1116_v42 = vsel %vm621_vm9, %v1115_v40, %v1098_v25  ;;  %v1736_v45 = vsel %vm1677_vm11, %v1316_v37, 0  ;;  %v1276_v49 = vperm.slane %v1270_v55, %v3263_v23  ;;  %v1288_v0 = vsel %vm621_vm9, %v1280_v44, %v1287_v26 }
 0x3d5   : > { %v1793_v39 = vsel %vm1677_vm11, %v1319_v33, 0  ;;  %v1313_v47 = vpack.c.bf16 %v1116_v42, %v1116_v42  ;;  %1745 = vmatpush.bf16.msrb.mxu0 %v1736_v45  ;;  %v1320_v51 = vpack.c.bf16 %v1288_v0, %v1288_v0  ;;  %v1118_v53 = vsel %vm621_vm9, %v1110_v17, %v1117_v35 }
 0x3d6   : > { %v1281_v57 = vrot.slane %v1276_v49, 4  ;;  %v1314_v46 = vpack.c.bf16 %v1118_v53, %v1118_v53  ;;  %v1283_v54 = vrot.slane %v1264_v32, 4 }
 0x3d7   : > { %v1679_v59 = vsel %vm1677_vm11, %v1313_v47, 0  ;;  %v1812_v56 = vsel %vm1677_vm11, %v1320_v51, 0 }
 0x3d8   : > { %1802 = vmatpush.bf16.msrb.mxu3 %v1793_v39  ;;  %1688 = vmatpush.bf16.msra.mxu1 %v1679_v59  ;;  %v1282_v23 = vsel %vm621_vm9, %v1281_v57, %v1264_v32  ;;  %v1698_v62 = vsel %vm1677_vm11, %v1314_v46, 0  ;;  %v1284_v3 = vsel %vm621_vm9, %v1276_v49, %v1283_v54 }
 0x3d9   : > { %1821 = vmatpush.bf16.msra.mxu0 %v1812_v56  ;;  %v1317_v4 = vpack.c.bf16 %v1282_v23, %v1282_v23  ;;  %1707 = vmatpush.bf16.msra.mxu2 %v1698_v62  ;;  %v1318_v58 = vpack.c.bf16 %v1284_v3, %v1284_v3 }
 0x3db   : > { %v1755_v9 = vsel %vm1677_vm11, %v1317_v4, 0  ;;  %v1774_v30 = vsel %vm1677_vm11, %v1318_v58, 0 }
 0x3dc   : > { %1764 = vmatpush.bf16.msrb.mxu1 %v1755_v9 }
 0x3dd   : > { %1783 = vmatpush.bf16.msrb.mxu2 %v1774_v30 }
 0x403   : > { %v1524_v6 = vpop.xlane.xlu1 %1523 }
 0x404   : > { %2772 = vrcp.f32 %v1524_v6  ;;  %v1557_v38 = vand.u32 2147483648, %v1524_v6  ;;  %v1555_v13 = vand.u32 2147483647, %v1524_v6  ;;  %vm1551_vm13 = vweird.f32 %v1524_v6 }
 0x406   : > { %v1558_v22 = vor.u32 1.1754944e-38, %v1557_v38  ;;  %vm1556_vm15 = vcmp.eq.f32.partialorder %v1555_v13, 8.507059e+37 }
 0x40a   : > { %v2773_v7 = vpop.eup %2772 }
 0x40b   : > { %v1547_v10 = vmul.f32 %v2773_v7, %v1524_v6  ;;  %vm1552_vm12 = vweird.f32 %v2773_v7 }
 0x40c   : > { %v1530_v14 = vpop.xlane.xlu0 %1529  ;;  %vm1553_vm14 = vmor %vm1551_vm13, %vm1552_vm12 }
 0x40d   : > { %v1548_v15 = vsub.f32 1.0, %v1547_v10  ;;  %2774 = vrcp.f32 %v1530_v14  ;;  %v1527_v16 = vpop.xlane.xlu2 %1526  ;;  %v1587_v19 = vand.u32 2147483648, %v1530_v14  ;;  %v1585_v31 = vand.u32 2147483647, %v1530_v14 }
 0x40e   : > { %2776 = vrcp.f32 %v1527_v16  ;;  %v1572_v32 = vand.u32 2147483648, %v1527_v16  ;;  %v1570_v36 = vand.u32 2147483647, %v1527_v16  ;;  %vm1581_vm3 = vweird.f32 %v1530_v14 }
 0x40f   : > { %v1549_v60 = vmul.f32 %v2773_v7, %v1548_v15  ;;  %vm1566_vm5 = vweird.f32 %v1527_v16  ;;  %vm1586_vm6 = vcmp.eq.f32.partialorder %v1585_v31, 8.507059e+37 }
 0x410   : > { %v1573_v33 = vor.u32 1.1754944e-38, %v1572_v32  ;;  %vm1571_vm8 = vcmp.eq.f32.partialorder %v1570_v36, 8.507059e+37 }
 0x411   : > { %v1550_v21 = vadd.f32 %v2773_v7, %v1549_v60 }
 0x413   : > { %v2775_v48 = vpop.eup %2774  ;;  %v1554_v24 = vsel %vm1553_vm14, %v2773_v7, %v1550_v21 }
 0x414   : > { %v2777_v44 = vpop.eup %2776  ;;  %v1559_v2 = vsel %vm1556_vm15, %v1558_v22, %v1554_v24  ;;  %v1577_v63 = vmul.f32 %v2775_v48, %v1530_v14  ;;  %vm1582_vm0 = vweird.f32 %v2775_v48 }
 0x415   : > { %v1560_v25 = vmul.f32 %v3523_v8, %v1559_v2  ;;  %v1562_v1 = vmul.f32 %v2777_v44, %v1527_v16  ;;  %v1533_v27 = vpop.xlane.xlu2 %1532  ;;  %vm1567_vm2 = vweird.f32 %v2777_v44  ;;  %vm1583_vm4 = vmor %vm1581_vm3, %vm1582_vm0  ;;  %v1588_v8 = vor.u32 1.1754944e-38, %v1587_v19 }
 0x416   : > { %v1578_v11 = vsub.f32 1.0, %v1577_v63  ;;  %2778 = vrcp.f32 %v1533_v27  ;;  %vm1568_vm7 = vmor %vm1566_vm5, %vm1567_vm2  ;;  %v1602_v53 = vand.u32 2147483648, %v1533_v27  ;;  %v1600_v54 = vand.u32 2147483647, %v1533_v27 }
 0x417   : > { %v1563_v17 = vsub.f32 1.0, %v1562_v1  ;;  %v1666_v43 = vpack.c.bf16 %v1560_v25, %v1560_v25  ;;  %vm1596_vm12 = vweird.f32 %v1533_v27 }
 0x418   : > { %v1579_v29 = vmul.f32 %v2775_v48, %v1578_v11  ;;  %vm1601_vm14 = vcmp.eq.f32.partialorder %v1600_v54, 8.507059e+37 }
 0x419   : > { %v1564_v34 = vmul.f32 %v2777_v44, %v1563_v17  ;;  %2539 = vmatmul.msk.bf16.vlgmr.msra.gmra.mxu1 %vm1321_vm10, %v1666_v43 }
 0x41a   : > { %v1580_v40 = vadd.f32 %v2775_v48, %v1579_v29 }
 0x41b   : > { %v1565_v37 = vadd.f32 %v2777_v44, %v1564_v34 }
 0x41c   : > { %v2779_v26 = vpop.eup %2778  ;;  %v1584_v41 = vsel %vm1583_vm4, %v2775_v48, %v1580_v40 }
 0x41d   : > { %v1589_v55 = vsel %vm1586_vm6, %v1588_v8, %v1584_v41  ;;  %v1569_v35 = vsel %vm1568_vm7, %v2777_v44, %v1565_v37  ;;  %v1592_v42 = vmul.f32 %v2779_v26, %v1533_v27  ;;  %v1542_v45 = vpop.xlane.xlu1 %1541  ;;  %v3648_v49 = vpop.xlane.xlu2 %1535  ;;  %vm1597_vm9 = vweird.f32 %v2779_v26 }
 0x41e   : > { %v1574_v0 = vsel %vm1571_vm8, %v1573_v33, %v1569_v35  ;;  %2780 = vrcp.f32 %v1542_v45  ;;  %v1590_v39 = vmul.f32 %v3527_v52, %v1589_v55  ;;  %v3653_v57 = vpop.xlane.xlu0 %1538  ;;  %vm1598_vm13 = vmor %vm1596_vm12, %vm1597_vm9  ;;  %v1603_v52 = vor.u32 1.1754944e-38, %v1602_v53 }
 0x41f   : > { %v1575_v47 = vmul.f32 %v3529_v61, %v1574_v0  ;;  %v1593_v51 = vsub.f32 1.0, %v1592_v42  ;;  %2782 = vrcp.f32 %v3648_v49  ;;  %vm1641_vm15 = vweird.f32 %v1542_v45 }
 0x420   : > { %2784 = vrcp.f32 %v3653_v57  ;;  %v1668_v56 = vpack.c.bf16 %v1590_v39, %v1590_v39  ;;  %v1645_v10 = vand.u32 2147483647, %v1542_v45  ;;  %v1647_v14 = vand.u32 2147483648, %v1542_v45 }
 0x421   : > { %v1594_v46 = vmul.f32 %v2779_v26, %v1593_v51  ;;  %v1667_v23 = vpack.c.bf16 %v1575_v47, %v1575_v47  ;;  %v1615_v13 = vand.u32 2147483647, %v3648_v49  ;;  %v1617_v21 = vand.u32 2147483648, %v3648_v49  ;;  %v1827_v51 = vld [vmem:[%s3214_s23] sm:$0xf] }
 0x422   : > { %2541 = vmatmul.msk.bf16.vlgmr.msra.gmra.mxu3 %vm1321_vm10, %v1668_v56  ;;  %v1632_v44 = vand.u32 2147483648, %v3653_v57  ;;  %v1648_v2 = vor.u32 1.1754944e-38, %v1647_v14  ;;  %v1630_v25 = vand.u32 2147483647, %v3653_v57  ;;  %vm1646_vm5 = vcmp.eq.f32.partialorder %v1645_v10, 8.507059e+37 }
 0x423   : > { %v1595_v59 = vadd.f32 %v2779_v26, %v1594_v46  ;;  %2540 = vmatmul.msk.bf16.vlgmr.msra.gmra.mxu2 %vm1321_vm10, %v1667_v23  ;;  %vm1611_vm6 = vweird.f32 %v3648_v49  ;;  %v1618_v19 = vor.u32 1.1754944e-38, %v1617_v21  ;;  %vm1626_vm8 = vweird.f32 %v3653_v57  ;;  %v1828_v46 = vld [vmem:[%s3214_s23 + $0x4] sm:$0xf]  ;;  %v1830_v56 = vld [vmem:[%s3214_s23 + $0xc] sm:$0xf] }
 0x424   : > { %v2781_v62 = vpop.eup %2780  ;;  %vm1616_vm9 = vcmp.eq.f32.partialorder %v1615_v13, 8.507059e+37  ;;  %v1633_v32 = vor.u32 1.1754944e-38, %v1632_v44  ;;  %v1843_v53 = vsel %vm1677_vm11, %v1827_v51, 0  ;;  %v1900_v23 = vsel %vm1677_vm11, %v1830_v56, 0 }
 0x425   : > { %v1599_v3 = vsel %vm1598_vm13, %v2779_v26, %v1595_v59  ;;  %v1637_v61 = vmul.f32 %v2781_v62, %v1542_v45  ;;  %v2783_v4 = vpop.eup %2782  ;;  %vm1642_vm0 = vweird.f32 %v2781_v62  ;;  %vm1631_vm13 = vcmp.eq.f32.partialorder %v1630_v25, 8.507059e+37  ;;  %1852 = vmatpush.bf16.msra.mxu1 %v1843_v53 }
 0x426   : > { %v1604_v58 = vsel %vm1601_vm14, %v1603_v52, %v1599_v3  ;;  %v2785_v9 = vpop.eup %2784  ;;  %v1607_v7 = vmul.f32 %v2783_v4, %v3648_v49  ;;  %v1545_v16 = vpop.xlane.xlu0 %1544  ;;  %vm1612_vm2 = vweird.f32 %v2783_v4  ;;  %vm1643_vm3 = vmor %vm1641_vm15, %vm1642_vm0  ;;  %v1862_v59 = vsel %vm1677_vm11, %v1828_v46, 0 }
 0x427   : > { %v1605_v30 = vmul.f32 %v3535_v5, %v1604_v58  ;;  %v1638_v6 = vsub.f32 1.0, %v1637_v61  ;;  %v1622_v15 = vmul.f32 %v2785_v9, %v3653_v57  ;;  %2786 = vrcp.f32 %v1545_v16  ;;  %vm1613_vm7 = vmor %vm1611_vm6, %vm1612_vm2  ;;  %v1829_v57 = vld [vmem:[%s3214_s23 + $0x8] sm:$0xf]  ;;  %1871 = vmatpush.bf16.msra.mxu2 %v1862_v59 }
 0x428   : > { %v1608_v60 = vsub.f32 1.0, %v1607_v7  ;;  %vm1627_vm4 = vweird.f32 %v2785_v9  ;;  %v1662_v55 = vand.u32 2147483648, %v1545_v16  ;;  %vm1656_vm15 = vweird.f32 %v1545_v16 }
 0x429   : > { %v1639_v38 = vmul.f32 %v2781_v62, %v1638_v6  ;;  %v1623_v22 = vsub.f32 1.0, %v1622_v15  ;;  %v1669_v48 = vpack.c.bf16 %v1605_v30, %v1605_v30  ;;  %vm1628_vm12 = vmor %vm1626_vm8, %vm1627_vm4  ;;  %v1881_v54 = vsel %vm1677_vm11, %v1829_v57, 0 }
 0x42a   : > { %v1609_v24 = vmul.f32 %v2783_v4, %v1608_v60  ;;  %1890 = vmatpush.bf16.msra.mxu3 %v1881_v54 }
 0x42b   : > { %v1640_v5 = vadd.f32 %v2781_v62, %v1639_v38  ;;  %v1624_v63 = vmul.f32 %v2785_v9, %v1623_v22  ;;  %2542 = vmatmul.msk.bf16.vlgmr.msrb.gmra.mxu0 %vm1321_vm10, %v1669_v48 }
 0x42c   : > { %v1610_v27 = vadd.f32 %v2783_v4, %v1609_v24  ;;  %1909 = vmatpush.bf16.msrb.mxu0 %v1900_v23 }
 0x42d   : > { %v1644_v1 = vsel %vm1643_vm3, %v2781_v62, %v1640_v5  ;;  %v1625_v17 = vadd.f32 %v2785_v9, %v1624_v63  ;;  %v2787_v43 = vpop.eup %2786 }
 0x42e   : > { %v1649_v11 = vsel %vm1646_vm5, %v1648_v2, %v1644_v1  ;;  %v1614_v31 = vsel %vm1613_vm7, %v2783_v4, %v1610_v27  ;;  %v1652_v40 = vmul.f32 %v2787_v43, %v1545_v16  ;;  %vm1657_vm14 = vweird.f32 %v2787_v43 }
 0x42f   : > { %v1650_v29 = vmul.f32 %v3542_v18, %v1649_v11  ;;  %v1619_v34 = vsel %vm1616_vm9, %v1618_v19, %v1614_v31  ;;  %v1629_v36 = vsel %vm1628_vm12, %v2785_v9, %v1625_v17  ;;  %v1660_v18 = vand.u32 2147483647, %v1545_v16  ;;  %vm1658_vm0 = vmor %vm1656_vm15, %vm1657_vm14 }
 0x430   : > { %v1620_v8 = vmul.f32 %v3540_v50, %v1619_v34  ;;  %v1634_v37 = vsel %vm1631_vm13, %v1633_v32, %v1629_v36  ;;  %v1653_v33 = vsub.f32 1.0, %v1652_v40  ;;  %v1663_v50 = vor.u32 1.1754944e-38, %v1662_v55  ;;  %v3698_v32 = vld [vmem:[%s3204_s10] sm:$0x3f] }
 0x431   : > { %v1672_v26 = vpack.c.bf16 %v1650_v29, %v1650_v29  ;;  %v1635_v41 = vmul.f32 %v3548_v20, %v1634_v37  ;;  %vm1661_vm2 = vcmp.eq.f32.partialorder %v1660_v18, 8.507059e+37  ;;  %v1993_v34 = vperm.slane %v3698_v32, 2 }
 0x432   : > { %v1670_v35 = vpack.c.bf16 %v1620_v8, %v1620_v8  ;;  %v1654_v42 = vmul.f32 %v2787_v43, %v1653_v33 }
 0x433   : > { %v1671_v45 = vpack.c.bf16 %v1635_v41, %v1635_v41  ;;  %2545 = vmatmul.msk.bf16.vlgmr.msrb.gmra.mxu3 %vm1321_vm10, %v1672_v26 }
 0x434   : > { %2543 = vmatmul.msk.bf16.vlgmr.msrb.gmra.mxu1 %vm1321_vm10, %v1670_v35  ;;  %v1655_v49 = vadd.f32 %v2787_v43, %v1654_v42  ;;  %1957 = vmatpush.bf16.msrb.mxu3 %v1881_v54 }
 0x435   : > { %2544 = vmatmul.msk.bf16.vlgmr.msrb.gmra.mxu2 %vm1321_vm10, %v1671_v45  ;;  %1925 = vmatpush.bf16.msrb.mxu1 %v1843_v53 }
 0x436   : > { %v1659_v20 = vsel %vm1658_vm0, %v2787_v43, %v1655_v49  ;;  %1941 = vmatpush.bf16.msrb.mxu2 %v1862_v59 }
 0x437   : > { %v1664_v0 = vsel %vm1661_vm2, %v1663_v50, %v1659_v20 }
 0x438   : > { %v1665_v39 = vmul.f32 %v3554_v28, %v1664_v0 }
 0x43a   : > { %v1673_v47 = vpack.c.bf16 %v1665_v39, %v1665_v39 }
 0x43c   : > { %2546 = vmatmul.msk.bf16.vlgmr.msra.gmra.mxu0 %vm1321_vm10, %v1673_v47 }
 0x43d   : > { %1973 = vmatpush.bf16.msra.mxu0 %v1900_v23 }
 0x496   : > { %v1690_v28 = vpop.f32.mrf.mxu1 }
 0x497   : > { %v1831_v62 = vpack.c.bf16 %v1690_v28, %v1690_v28 }
 0x499   : > { %2547 = vmatmul.msk.bf16.vlgmr.msra.gmra.mxu1 %vm1321_vm10, %v1831_v62 }
 0x49e   : > { %v1692_v52 = vpop.f32.mrf.mxu1 }
 0x4a5   : > { %v1728_v3 = vpop.f32.mrf.mxu3 }
 0x4a6   : > { %v1709_v61 = vpop.f32.mrf.mxu2  ;;  %v1833_v4 = vpack.c.bf16 %v1728_v3, %v1728_v3 }
 0x4a7   : > { %v1832_v58 = vpack.c.bf16 %v1709_v61, %v1709_v61 }
 0x4a8   : > { %v1747_v9 = vpop.f32.mrf.mxu0  ;;  %2549 = vmatmul.msk.bf16.vlgmr.msra.gmra.mxu3 %vm1321_vm10, %v1833_v4 }
 0x4a9   : > { %v1834_v30 = vpack.c.bf16 %v1747_v9, %v1747_v9  ;;  %2548 = vmatmul.msk.bf16.vlgmr.msra.gmra.mxu2 %vm1321_vm10, %v1832_v58 }
 0x4ab   : > { %2550 = vmatmul.msk.bf16.vlgmr.msrb.gmra.mxu0 %vm1321_vm10, %v1834_v30 }
 0x4ad   : > { %v1730_v6 = vpop.f32.mrf.mxu3 }
 0x4ae   : > { %v1711_v7 = vpop.f32.mrf.mxu2 }
 0x4b0   : > { %v1749_v10 = vpop.f32.mrf.mxu0 }
 0x4b1   : > { %v1766_v14 = vpop.f32.mrf.mxu1 }
 0x4b2   : > { %v1835_v15 = vpack.c.bf16 %v1766_v14, %v1766_v14 }
 0x4b4   : > { %2551 = vmatmul.msk.bf16.vlgmr.msrb.gmra.mxu1 %vm1321_vm10, %v1835_v15 }
 0x4b6   : > { %v1804_v16 = vpop.f32.mrf.mxu3 }
 0x4b7   : > { %v1837_v38 = vpack.c.bf16 %v1804_v16, %v1804_v16 }
 0x4b8   : > { %v1785_v60 = vpop.f32.mrf.mxu2 }
 0x4b9   : > { %v1768_v13 = vpop.f32.mrf.mxu1  ;;  %v1836_v21 = vpack.c.bf16 %v1785_v60, %v1785_v60  ;;  %2553 = vmatmul.msk.bf16.vlgmr.msrb.gmra.mxu3 %vm1321_vm10, %v1837_v38  ;;  %v1823_v22 = vpop.f32.mrf.mxu0 }
 0x4ba   : > { %v1838_v48 = vpack.c.bf16 %v1823_v22, %v1823_v22 }
 0x4bb   : > { %2552 = vmatmul.msk.bf16.vlgmr.msrb.gmra.mxu2 %vm1321_vm10, %v1836_v21 }
 0x4bc   : > { %2554 = vmatmul.msk.bf16.vlgmr.msra.gmra.mxu0 %vm1321_vm10, %v1838_v48 }
 0x4be   : > { %v1806_v5 = vpop.f32.mrf.mxu3 }
 0x4c0   : > { %v1787_v24 = vpop.f32.mrf.mxu2 }
 0x4c1   : > { %v1825_v44 = vpop.f32.mrf.mxu0 }
 0x516   : > { %v1854_v2 = vpop.f32.mrf.mxu1 }
 0x517   : > { %v1979_v11 = vsel %vm460_vm1, %v1854_v2, 0.0 }
 0x51e   : > { %v1856_v63 = vpop.f32.mrf.mxu1 }
 0x528   : > { %v1911_v25 = vpop.f32.mrf.mxu0 }
 0x529   : > { %v1984_v40 = vsel %vm460_vm1, %v1911_v25, 0.0 }
 0x52b   : > { %v1892_v1 = vpop.f32.mrf.mxu3 }
 0x52c   : > { %v1873_v27 = vpop.f32.mrf.mxu2  ;;  %v1982_v43 = vsel %vm460_vm1, %v1892_v1, 0.0 }
 0x52d   : > { %v1980_v19 = vsel %vm460_vm1, %v1873_v27, 0.0 }
 0x52e   : > { %v1981_v17 = vadd.f32 %v1980_v19, %v1979_v11 }
 0x530   : > { %v1913_v29 = vpop.f32.mrf.mxu0  ;;  %v1983_v31 = vadd.f32 %v1982_v43, %v1981_v17 }
 0x531   : > { %v1927_v36 = vpop.f32.mrf.mxu1 }
 0x532   : > { %v1985_v8 = vadd.f32 %v1984_v40, %v1983_v31  ;;  %v1986_v39 = vsel %vm460_vm1, %v1927_v36, 0.0 }
 0x533   : > { %v1894_v26 = vpop.f32.mrf.mxu3 }
 0x534   : > { %v3702_v37 = vadd.f32 %v1993_v34, %v1985_v8  ;;  %v1875_v41 = vpop.f32.mrf.mxu2 }
 0x536   : > { %v3705_v33 = vmul.f32 0.70710677, %v3702_v37 }
 0x538   : > { %v2000_v55 = vmul.f32 %v3705_v33, %v3705_v33 }
 0x539   : > { %v1929_v35 = vpop.f32.mrf.mxu1  ;;  %v1975_v42 = vpop.f32.mrf.mxu0 }
 0x53a   : > { %v2001_v18 = vmin.f32 %v2000_v55, 16.0  ;;  %v1991_v28 = vsel %vm460_vm1, %v1975_v42, 0.0 }
 0x53c   : > { %v2002_v45 = vmul.f32 2.1237322e-06, %v2001_v18  ;;  %v1959_v49 = vpop.f32.mrf.mxu3  ;;  %v2013_v50 = vmul.f32 3.8918573e-05, %v2001_v18 }
 0x53d   : > { %v1989_v46 = vsel %vm460_vm1, %v1959_v49, 0.0 }
 0x53e   : > { %v1943_v20 = vpop.f32.mrf.mxu2  ;;  %v2003_v0 = vadd.f32 0.00028619796, %v2002_v45  ;;  %v2014_v51 = vadd.f32 0.001143296, %v2013_v50 }
 0x53f   : > { %v1987_v47 = vsel %vm460_vm1, %v1943_v20, 0.0 }
 0x540   : > { %v1988_v53 = vadd.f32 %v1987_v47, %v1986_v39  ;;  %v2004_v57 = vmul.f32 %v2003_v0, %v2001_v18  ;;  %v2015_v54 = vmul.f32 %v2014_v51, %v2001_v18  ;;  %v1996_v51 = vmul.f32 0.5, %v3702_v37 }
 0x541   : > { %v1977_v56 = vpop.f32.mrf.mxu0 }
 0x542   : > { %v1990_v59 = vadd.f32 %v1989_v46, %v1988_v53  ;;  %v2005_v23 = vadd.f32 0.0036580483, %v2004_v57  ;;  %v2016_v62 = vadd.f32 0.014752088, %v2015_v54  ;;  %v2801_v56 = vld [vmem:[#allocation2] sm:$0xff] }
 0x544   : > { %v1992_v52 = vadd.f32 %v1991_v28, %v1990_v59  ;;  %v1961_v3 = vpop.f32.mrf.mxu3  ;;  %v2017_v61 = vmul.f32 %v2016_v62, %v2001_v18  ;;  %v2006_v9 = vmul.f32 %v2005_v23, %v2001_v18 }
 0x546   : > { %v3713_v4 = vadd.f32 %v1993_v34, %v1992_v52  ;;  %v1945_v58 = vpop.f32.mrf.mxu2  ;;  %v2018_v30 = vadd.f32 0.112945676, %v2017_v61  ;;  %v2007_v14 = vadd.f32 0.05243302, %v2006_v9 }
 0x548   : > { %v3716_v6 = vmul.f32 0.70710677, %v3713_v4  ;;  %v2019_v7 = vmul.f32 %v2018_v30, %v2001_v18  ;;  %v2008_v21 = vmul.f32 %v2007_v14, %v2001_v18 }
 0x54a   : > { %v2040_v10 = vmul.f32 %v3716_v6, %v3716_v6  ;;  %v2020_v15 = vadd.f32 0.4994258, %v2019_v7  ;;  %v2009_v2 = vadd.f32 0.18741608, %v2008_v21 }
 0x54c   : > { %v2041_v16 = vmin.f32 %v2040_v10, 16.0  ;;  %v2021_v38 = vmul.f32 %v2020_v15, %v2001_v18  ;;  %v2010_v11 = vmul.f32 %v2009_v2, %v2001_v18  ;;  %v1997_v15 = vmul.f32 0.5, %v3713_v4 }
 0x54e   : > { %v2042_v60 = vmul.f32 2.1237322e-06, %v2041_v16  ;;  %v2053_v13 = vmul.f32 3.8918573e-05, %v2041_v16  ;;  %v2022_v22 = vadd.f32 1.0, %v2021_v38 }
 0x54f   : > { %v2011_v34 = vadd.f32 1.1283791, %v2010_v11 }
 0x550   : > { %v2043_v48 = vadd.f32 0.00028619796, %v2042_v60  ;;  %v2054_v5 = vadd.f32 0.001143296, %v2053_v13  ;;  %2788 = vrcp.f32 %v2022_v22  ;;  %v2034_v36 = vand.u32 2147483648, %v2022_v22  ;;  %v2802_v60 = vld [vmem:[#allocation2 + $0x8] sm:$0xff] }
 0x551   : > { %v2032_v8 = vand.u32 2147483647, %v2022_v22  ;;  %vm2028_vm11 = vweird.f32 %v2022_v22  ;;  %v2012_v45 = vmul.f32 %v2011_v34, %v3705_v33 }
 0x552   : > { %v2044_v24 = vmul.f32 %v2043_v48, %v2041_v16  ;;  %v2055_v44 = vmul.f32 %v2054_v5, %v2041_v16  ;;  %v2035_v42 = vor.u32 1.1754944e-38, %v2034_v36 }
 0x553   : > { %vm2033_vm4 = vcmp.eq.f32.partialorder %v2032_v8, 8.507059e+37 }
 0x554   : > { %v2056_v63 = vadd.f32 0.014752088, %v2055_v44  ;;  %v2045_v25 = vadd.f32 0.0036580483, %v2044_v24 }
 0x556   : > { %v2057_v1 = vmul.f32 %v2056_v63, %v2041_v16  ;;  %v2789_v27 = vpop.eup %2788  ;;  %v2046_v43 = vmul.f32 %v2045_v25, %v2041_v16 }
 0x557   : > { %v2024_v19 = vmul.f32 %v2789_v27, %v2022_v22  ;;  %vm2029_vm10 = vweird.f32 %v2789_v27 }
 0x558   : > { %v2058_v17 = vadd.f32 0.112945676, %v2057_v1  ;;  %v2047_v41 = vadd.f32 0.05243302, %v2046_v43  ;;  %vm2030_vm3 = vmor %vm2028_vm11, %vm2029_vm10 }
 0x559   : > { %v2025_v29 = vsub.f32 1.0, %v2024_v19 }
 0x55a   : > { %v2059_v31 = vmul.f32 %v2058_v17, %v2041_v16  ;;  %v2048_v50 = vmul.f32 %v2047_v41, %v2041_v16  ;;  %v2598_v17 = vld [vmem:[%s3186_s24 + $0x8] sm:$0xff] }
 0x55b   : > { %v2026_v40 = vmul.f32 %v2789_v27, %v2025_v29  ;;  %2165 = vmatpush.bf16.msra.mxu1 %v2598_v17  ;;  %v2597_v29 = vld [vmem:[%s3186_s24] sm:$0xff]  ;;  %s3871_s24 = scalar_lea.vmem [#allocation3], %s3176_s29 }
 0x55c   : > { %v2060_v26 = vadd.f32 0.4994258, %v2059_v31  ;;  %v2049_v47 = vadd.f32 0.18741608, %v2048_v50  ;;  %v2130_v50 = vperm.slane %v3698_v32, 3 }
 0x55d   : > { %v2027_v55 = vadd.f32 %v2789_v27, %v2026_v40 }
 0x55e   : > { %v2061_v35 = vmul.f32 %v2060_v26, %v2041_v16  ;;  %v2050_v54 = vmul.f32 %v2049_v47, %v2041_v16 }
 0x55f   : > { %v2031_v18 = vsel %vm2030_vm3, %v2789_v27, %v2027_v55  ;;  %2166 = vmatpush.bf16.msra.mxu1 %v2597_v29 }
 0x560   : > { %v2062_v49 = vadd.f32 1.0, %v2061_v35  ;;  %v2036_v20 = vsel %vm2033_vm4, %v2035_v42, %v2031_v18  ;;  %v2051_v52 = vadd.f32 1.1283791, %v2050_v54 }
 0x561   : > { %v2037_v0 = vmul.f32 %v2036_v20, %v2012_v45 }
 0x562   : > { %2790 = vrcp.f32 %v2062_v49  ;;  %v2074_v62 = vand.u32 2147483648, %v2062_v49  ;;  %v2072_v61 = vand.u32 2147483647, %v2062_v49  ;;  %vm2068_vm6 = vweird.f32 %v2062_v49 }
 0x563   : > { %v2555_v39 = vclamps-f32 %v2037_v0, 1.0  ;;  %v2052_v9 = vmul.f32 %v2051_v52, %v3716_v6 }
 0x564   : > { %v2075_v37 = vor.u32 1.1754944e-38, %v2074_v62  ;;  %vm2073_vm8 = vcmp.eq.f32.partialorder %v2072_v61, 8.507059e+37 }
 0x565   : > { %v2080_v53 = vadd.f32 1.0, %v2555_v39  ;;  %v2133_v39 = vperm.slane %v3698_v32, 4 }
 0x567   : > { %v2082_v46 = vmul.f32 %v2080_v53, %v1996_v51 }
 0x568   : > { %v2791_v57 = vpop.eup %2790 }
 0x569   : > { %v2064_v59 = vmul.f32 %v2791_v57, %v2062_v49  ;;  %v3722_v23 = vadd.f32 %v2801_v56, %v2082_v46  ;;  %vm2069_vm5 = vweird.f32 %v2791_v57 }
 0x56a   : > { %vm2070_vm7 = vmor %vm2068_vm6, %vm2069_vm5 }
 0x56b   : > { %v2065_v33 = vsub.f32 1.0, %v2064_v59  ;;  %v2086_v28 = vsel %vm460_vm1, %v3722_v23, 0.0  ;;  %v2749_v59 = vld [vmem:[%s3871_s24] ss:$0 sm:$0xff] }
 0x56c   : > { %2087 = vadd.xlane.f32.xlu1 %v2086_v28 }
 0x56d   : > { %v2066_v3 = vmul.f32 %v2791_v57, %v2065_v33 }
 0x56f   : > { %v2067_v58 = vadd.f32 %v2791_v57, %v2066_v3 }
 0x571   : > { %v2071_v30 = vsel %vm2070_vm7, %v2791_v57, %v2067_v58 }
 0x572   : > { %v2076_v7 = vsel %vm2073_vm8, %v2075_v37, %v2071_v30  ;;  %vm2295_vm8 = vcmask 523264  }
 0x573   : > { %v2077_v10 = vmul.f32 %v2076_v7, %v2052_v9 }
 0x575   : > { %v2556_v14 = vclamps-f32 %v2077_v10, 1.0 }
 0x577   : > { %v2081_v16 = vadd.f32 1.0, %v2556_v14 }
 0x579   : > { %v2083_v38 = vmul.f32 %v2081_v16, %v1997_v15 }
 0x57b   : > { %v3728_v13 = vadd.f32 %v2802_v60, %v2083_v38 }
 0x57d   : > { %v2089_v21 = vsel %vm460_vm1, %v3728_v13, 0.0 }
 0x57e   : > { %2090 = vadd.xlane.f32.xlu2 %v2089_v21 }
 0x5df   : > { %v2088_v22 = vpop.xlane.xlu1 %2087 }
 0x5e0   : > { %v2092_v48 = vmul.f32 %v2088_v22, %v3226_v12 }
 0x5e2   : > { %v2094_v6 = vsub.f32 %v3722_v23, %v2092_v48 }
 0x5e4   : > { %v2096_v5 = vmul.f32 %v2094_v6, %v2094_v6 }
 0x5e6   : > { %v2098_v24 = vsel %vm460_vm1, %v2096_v5, 0.0 }
 0x5e7   : > { %2099 = vadd.xlane.f32.xlu0 %v2098_v24 }
 0x5f1   : > { %v2091_v4 = vpop.xlane.xlu2 %2090 }
 0x5f2   : > { %v2093_v44 = vmul.f32 %v2091_v4, %v3226_v12 }
 0x5f4   : > { %v2095_v2 = vsub.f32 %v3728_v13, %v2093_v44 }
 0x5f6   : > { %v2097_v63 = vmul.f32 %v2095_v2, %v2095_v2 }
 0x5f8   : > { %v2101_v25 = vsel %vm460_vm1, %v2097_v63, 0.0 }
 0x5f9   : > { %2102 = vadd.xlane.f32.xlu1 %v2101_v25 }
 0x65a   : > { %v2100_v1 = vpop.xlane.xlu0 %2099 }
 0x65b   : > { %v2104_v27 = vmul.f32 %v2100_v1, %v3226_v12  ;;  %v2602_v1 = vld [vmem:[%s3219_s21 + $0x18] sm:$0xff] }
 0x65c   : > { %2303 = vmatpush.bf16.msra.mxu2 %v2602_v1  ;;  %v2270_v1 = vperm.slane %v3698_v32, 5 }
 0x65d   : > { %v2106_v11 = vadd.f32 1e-05, %v2104_v27 }
 0x65f   : > { %2792 = vrsqrt.f32 %v2106_v11  ;;  %vm2114_vm12 = vweird.f32 %v2106_v11 }
 0x665   : > { %v2793_v19 = vpop.eup %2792 }
 0x666   : > { %v2109_v43 = vmul.f32 %v2793_v19, %v2106_v11  ;;  %vm2115_vm9 = vweird.f32 %v2793_v19 }
 0x667   : > { %vm2116_vm13 = vmor %vm2114_vm12, %vm2115_vm9 }
 0x668   : > { %v2110_v31 = vmul.f32 %v2793_v19, %v2109_v43 }
 0x66a   : > { %v2111_v8 = vmul.f32 0.5, %v2110_v31  ;;  %v2601_v31 = vld [vmem:[%s3219_s21 + $0x10] sm:$0xff] }
 0x66b   : > { %2304 = vmatpush.bf16.msra.mxu2 %v2601_v31 }
 0x66c   : > { %v2103_v34 = vpop.xlane.xlu1 %2102  ;;  %v2112_v26 = vsub.f32 1.5, %v2111_v8 }
 0x66d   : > { %v2105_v36 = vmul.f32 %v2103_v34, %v3226_v12 }
 0x66e   : > { %v2113_v55 = vmul.f32 %v2793_v19, %v2112_v26  ;;  %v2600_v26 = vld [vmem:[%s3219_s21 + $0x8] sm:$0xff] }
 0x66f   : > { %v2107_v40 = vadd.f32 1e-05, %v2105_v36  ;;  %2305 = vmatpush.bf16.msra.mxu2 %v2600_v26 }
 0x670   : > { %v2117_v45 = vsel %vm2116_vm13, %v2793_v19, %v2113_v55 }
 0x671   : > { %2794 = vrsqrt.f32 %v2107_v40  ;;  %v2128_v12 = vmul.f32 %v2117_v45, %v2094_v6  ;;  %vm2124_vm15 = vweird.f32 %v2107_v40 }
 0x673   : > { %v2131_v47 = vmul.f32 %v2130_v50, %v2128_v12 }
 0x675   : > { %v2134_v57 = vadd.f32 %v2133_v39, %v2131_v47 }
 0x677   : > { %v2795_v41 = vpop.eup %2794 }
 0x678   : > { %v2119_v35 = vmul.f32 %v2795_v41, %v2107_v40  ;;  %vm2125_vm14 = vweird.f32 %v2795_v41 }
 0x679   : > { %vm2126_vm0 = vmor %vm2124_vm15, %vm2125_vm14 }
 0x67a   : > { %v2120_v42 = vmul.f32 %v2795_v41, %v2119_v35  ;;  %v2599_v35 = vld [vmem:[%s3219_s21] sm:$0xff] }
 0x67b   : > { %2306 = vmatpush.bf16.msra.mxu2 %v2599_v35 }
 0x67c   : > { %v2121_v18 = vmul.f32 0.5, %v2120_v42 }
 0x67e   : > { %v2122_v49 = vsub.f32 1.5, %v2121_v18 }
 0x680   : > { %v2123_v20 = vmul.f32 %v2795_v41, %v2122_v49 }
 0x682   : > { %v2127_v0 = vsel %vm2126_vm0, %v2795_v41, %v2123_v20 }
 0x683   : > { %v2129_v51 = vmul.f32 %v2127_v0, %v2095_v2 }
 0x685   : > { %v2132_v53 = vmul.f32 %v2130_v50, %v2129_v51 }
 0x687   : > { %v2135_v46 = vadd.f32 %v2133_v39, %v2132_v53 }
 0x689   : > { %v2136_v54 = vpack.c.bf16 %v2135_v46, %v2134_v57 }
 0x68b   : > { %2565 = vmatmul.msk.bf16.vlgmr.msra.gmra.mxu1 %vm460_vm1, %v2136_v54 }
 0x708   : > { %v2168_v56 = vpop.f32.mrf.mxu1 }
 0x709   : > { %v3747_v33 = vadd.f32 %v2749_v59, %v2168_v56 }
 0x70b   : > { %v3750_v28 = vmul.f32 0.70710677, %v3747_v33 }
 0x70d   : > { %v2177_v62 = vmul.f32 %v3750_v28, %v3750_v28 }
 0x70f   : > { %v2178_v52 = vmin.f32 %v2177_v62, 16.0 }
 0x710   : > { %v2170_v3 = vpop.f32.mrf.mxu1 }
 0x711   : > { %v2179_v61 = vmul.f32 2.1237322e-06, %v2178_v52  ;;  %v2190_v58 = vmul.f32 3.8918573e-05, %v2178_v52  ;;  %v3754_v37 = vadd.f32 %v2749_v59, %v2170_v3 }
 0x713   : > { %v2180_v9 = vadd.f32 0.00028619796, %v2179_v61  ;;  %v2191_v30 = vadd.f32 0.001143296, %v2190_v58  ;;  %v3757_v7 = vmul.f32 0.70710677, %v3754_v37 }
 0x715   : > { %v2192_v10 = vmul.f32 %v2191_v30, %v2178_v52  ;;  %v2217_v14 = vmul.f32 %v3757_v7, %v3757_v7  ;;  %v2181_v15 = vmul.f32 %v2180_v9, %v2178_v52 }
 0x717   : > { %v2193_v16 = vadd.f32 0.014752088, %v2192_v10  ;;  %v2218_v38 = vmin.f32 %v2217_v14, 16.0  ;;  %v2182_v48 = vadd.f32 0.0036580483, %v2181_v15 }
 0x719   : > { %v2194_v60 = vmul.f32 %v2193_v16, %v2178_v52  ;;  %v2219_v21 = vmul.f32 2.1237322e-06, %v2218_v38  ;;  %v2230_v22 = vmul.f32 3.8918573e-05, %v2218_v38  ;;  %v2183_v63 = vmul.f32 %v2182_v48, %v2178_v52 }
 0x71b   : > { %v2195_v6 = vadd.f32 0.112945676, %v2194_v60  ;;  %v2220_v5 = vadd.f32 0.00028619796, %v2219_v21  ;;  %v2231_v24 = vadd.f32 0.001143296, %v2230_v22 }
 0x71c   : > { %v2184_v43 = vadd.f32 0.05243302, %v2183_v63 }
 0x71d   : > { %v2196_v4 = vmul.f32 %v2195_v6, %v2178_v52  ;;  %v2221_v44 = vmul.f32 %v2220_v5, %v2218_v38  ;;  %v2232_v2 = vmul.f32 %v2231_v24, %v2218_v38  ;;  %v2173_v24 = vmul.f32 0.5, %v3747_v33 }
 0x71e   : > { %v2185_v8 = vmul.f32 %v2184_v43, %v2178_v52 }
 0x71f   : > { %v2197_v25 = vadd.f32 0.4994258, %v2196_v4  ;;  %v2222_v27 = vadd.f32 0.0036580483, %v2221_v44  ;;  %v2233_v11 = vadd.f32 0.014752088, %v2232_v2 }
 0x720   : > { %v2186_v18 = vadd.f32 0.18741608, %v2185_v8  ;;  %v2174_v4 = vmul.f32 0.5, %v3754_v37 }
 0x721   : > { %v2198_v19 = vmul.f32 %v2197_v25, %v2178_v52  ;;  %v2234_v17 = vmul.f32 %v2233_v11, %v2218_v38  ;;  %v2223_v34 = vmul.f32 %v2222_v27, %v2218_v38 }
 0x722   : > { %v2187_v0 = vmul.f32 %v2186_v18, %v2178_v52 }
 0x723   : > { %v2199_v29 = vadd.f32 1.0, %v2198_v19  ;;  %v2235_v36 = vadd.f32 0.112945676, %v2234_v17  ;;  %v2224_v41 = vadd.f32 0.05243302, %v2223_v34 }
 0x724   : > { %v2188_v46 = vadd.f32 1.1283791, %v2187_v0 }
 0x725   : > { %2796 = vrcp.f32 %v2199_v29  ;;  %v2236_v40 = vmul.f32 %v2235_v36, %v2218_v38  ;;  %v2225_v50 = vmul.f32 %v2224_v41, %v2218_v38  ;;  %v2211_v47 = vand.u32 2147483648, %v2199_v29 }
 0x726   : > { %v2209_v53 = vand.u32 2147483647, %v2199_v29  ;;  %vm2205_vm10 = vweird.f32 %v2199_v29  ;;  %v2189_v58 = vmul.f32 %v2188_v46, %v3750_v28 }
 0x727   : > { %v2237_v55 = vadd.f32 0.4994258, %v2236_v40  ;;  %v2226_v51 = vadd.f32 0.18741608, %v2225_v50  ;;  %v2212_v56 = vor.u32 1.1754944e-38, %v2211_v47 }
 0x728   : > { %vm2210_vm3 = vcmp.eq.f32.partialorder %v2209_v53, 8.507059e+37 }
 0x729   : > { %v2238_v42 = vmul.f32 %v2237_v55, %v2218_v38  ;;  %v2227_v62 = vmul.f32 %v2226_v51, %v2218_v38 }
 0x72b   : > { %v2797_v45 = vpop.eup %2796  ;;  %v2239_v12 = vadd.f32 1.0, %v2238_v42  ;;  %v2228_v52 = vadd.f32 1.1283791, %v2227_v62 }
 0x72c   : > { %v2201_v49 = vmul.f32 %v2797_v45, %v2199_v29  ;;  %vm2206_vm2 = vweird.f32 %v2797_v45 }
 0x72d   : > { %2798 = vrcp.f32 %v2239_v12  ;;  %vm2207_vm11 = vmor %vm2205_vm10, %vm2206_vm2  ;;  %v2251_v30 = vand.u32 2147483648, %v2239_v12  ;;  %v2249_v15 = vand.u32 2147483647, %v2239_v12  ;;  %vm2245_vm5 = vweird.f32 %v2239_v12 }
 0x72e   : > { %v2202_v20 = vsub.f32 1.0, %v2201_v49  ;;  %v2229_v22 = vmul.f32 %v2228_v52, %v3757_v7 }
 0x72f   : > { %v2252_v60 = vor.u32 1.1754944e-38, %v2251_v30  ;;  %vm2250_vm7 = vcmp.eq.f32.partialorder %v2249_v15, 8.507059e+37 }
 0x730   : > { %v2203_v39 = vmul.f32 %v2797_v45, %v2202_v20 }
 0x732   : > { %v2204_v57 = vadd.f32 %v2797_v45, %v2203_v39 }
 0x733   : > { %v2799_v54 = vpop.eup %2798 }
 0x734   : > { %v2208_v59 = vsel %vm2207_vm11, %v2797_v45, %v2204_v57  ;;  %v2241_v3 = vmul.f32 %v2799_v54, %v2239_v12  ;;  %vm2246_vm4 = vweird.f32 %v2799_v54 }
 0x735   : > { %v2213_v61 = vsel %vm2210_vm3, %v2212_v56, %v2208_v59  ;;  %vm2247_vm6 = vmor %vm2245_vm5, %vm2246_vm4 }
 0x736   : > { %v2242_v9 = vsub.f32 1.0, %v2241_v3  ;;  %v2214_v10 = vmul.f32 %v2213_v61, %v2189_v58 }
 0x738   : > { %v2243_v14 = vmul.f32 %v2799_v54, %v2242_v9  ;;  %v2566_v21 = vclamps-f32 %v2214_v10, 1.0 }
 0x73a   : > { %v2244_v16 = vadd.f32 %v2799_v54, %v2243_v14  ;;  %v2257_v5 = vadd.f32 1.0, %v2566_v21 }
 0x73c   : > { %v2248_v38 = vsel %vm2247_vm6, %v2799_v54, %v2244_v16  ;;  %v2259_v2 = vmul.f32 %v2257_v5, %v2173_v24 }
 0x73d   : > { %v2253_v48 = vsel %vm2250_vm7, %v2252_v60, %v2248_v38 }
 0x73e   : > { %v2254_v6 = vmul.f32 %v2253_v48, %v2229_v22 }
 0x740   : > { %v2567_v28 = vclamps-f32 %v2254_v6, 1.0 }
 0x742   : > { %v2258_v44 = vadd.f32 1.0, %v2567_v28 }
 0x744   : > { %v2260_v63 = vmul.f32 %v2258_v44, %v2174_v4 }
 0x746   : > { %v2261_v25 = vpack.c.bf16 %v2260_v63, %v2259_v2 }
 0x748   : > { %2584 = vmatmul.msk.bf16.vlgmr.msra.gmra.mxu2 %vm2295_vm8, %v2261_v25 }
 0x7cb   : > { %v2308_v27 = vpop.f32.mrf.mxu2 }
 0x7cc   : > { %v2309_v7 = vadd.f32 %v2308_v27, %v2270_v1 }
 0x7ce   : > { %v2313_v11 = vadd.f32 %v2309_v7, %v3722_v23 }
 0x7d0   : > { %2315 = vst.msk [vmem:[#allocation2] sm:$0xff] %vm460_vm1, %v2313_v11 }
 0x7d3   : > { %v2310_v19 = vpop.f32.mrf.mxu2 }
 0x7d4   : > { %v2311_v17 = vadd.f32 %v2310_v19, %v2270_v1  ;;  %2320 = sbr.rel (%p2585_p10) target bundleno = 2011 (0x7db), region = 64 }
 0x7d6   : > { %v2314_v33 = vadd.f32 %v2311_v17, %v3728_v13 }
 0x7d8   : > { %2316 = vst.msk [vmem:[#allocation2 + $0x8] sm:$0xff] %vm460_vm1, %v2314_v33 }
 0x7d9   : > { %2321 = vst.msk [vmem:[%s3221_s22] sm:$0xff] %vm460_vm1, %v2313_v11 }
 0x7da   : > { %2322 = vst.msk [vmem:[%s3221_s22 + $0x8] sm:$0xff] %vm460_vm1, %v2314_v33 }
 0x7db PF: > { %s2603_s29 = sshll.u32 %s2977_s8, 4  ;;  %s2336_s12 = sshll.u32 %s3221_s22, 4  ;;  %s2337_s12 = int_to_ptr.vmem [resolvable:$true] %s2336_s12 }
 0x7dc   : > { %s2335_s23 = scalar_lea.hbm %s3840_s7, %s2603_s29  ;;  %s3872_s13 = sand.u32 1, %s2953_s25  }
 0x7dd   : > { %s2338_s30 = sshll.u32 %s2335_s23, 4  ;;  %s2324_s21 = scalar_lea.sflag [#allocation5], %s3872_s13  ;;  %s2339_s30 = int_to_ptr.hbm [resolvable:$true] %s2338_s30 }
 0x7de   : > { %s2877_s5 = sshra.s32 %s2339_s30, 4  ;;  %s2883_s8 = scalar_lea.hbm %s3840_s7, 32  ;;  %s2878_s5 = int_to_ptr.hbm [resolvable:$true] %s2877_s5 }
 0x7df   : > { %s2879_s28 = scalar_lea.hbm %s2878_s5, 16  ;;  %p2884_p1 = scmp.lt.s32.totalorder %s2878_s5, %s3840_s7 }
 0x7e0   : > { %p2880_p11 = scmp.ne.s32.totalorder %s2878_s5, %s2879_s28  ;;  %p2885_p4 = scmp.lt.s32.totalorder %s2883_s8, %s2879_s28 }
 0x7e2   : > { %p2881_p13 = pnand %p2880_p11, %p3137_p12  ;;  %p2886_p5 = por %p2885_p4, %p2884_p1 }
 0x7e4   : > { %p2882_p0 = pneg %p2881_p13 }
 0x7e6   : > { %p2887_p6 = pnand %p2886_p5, %p2882_p0 }
 0x7e8   : > { %2890 = shalt.err (!%p2887_p6)
}
 0x7e9   : > { %s3007_s22 = smov 128   ;;  %s3008_s17 = smov 8  }
 0x7ea   : > { %2608 = dma.vmem_to_hbm [thread:$0]  (%p3137_p12), %s2337_s12, 256, %s2339_s30, %s2324_s21, %s3007_s22, %s3007_s22, %s3008_s17  }
 0x7eb PF: > { %s3873_s14 = sld [smem:[#allocation12_spill]]  ;;  %p2622_p7 = scmp.ge.s32.totalorder %s2989_s11, 2 }
 0x7ed   : > { %p2618_p3 = pnand %p2622_p7, %p3147_p2 }
 0x7ef   : > { %p2619_p9 = pneg %p2618_p3 }
 0x7f1   : > { %s2353_s18 = sand.u32 1, %s3873_s14  }
 0x7f2   : > { %s2354_s2 = scalar_lea.sflag [#allocation5], %s2353_s18 }
 0x7f3   : > { %2944 = dma.done.wait (%p2619_p9), %s2354_s2, 256  }
 0x7f4   : > { %2946 = vsyncadd (%p2619_p9), %s2354_s2, 4294967040  ;;  %s26_s11 = sadd.s32 1, %s2989_s11   ;;  %s3875_s29 = sld [smem:[#allocation13_spill]] }
 0x7f5   : > { %p23_p8 = scmp.ge.s32.totalorder %s26_s11, 6   ;;  %s3876_s26 = sld [smem:[#allocation21_spill]] }
 0x7f6   : > { %s3877_s27 = sld [smem:[#allocation14_spill]]  ;;  %s3884_s24 = smov %s2953_s25 }
 0x7f7   : > { %s3878_s28 = sld [smem:[#allocation15_spill]] }
 0x7f8   : > { %s3879_s10 = sld [smem:[#allocation20_spill]] }
 0x7f9   : > { %s3880_s30 = sld [smem:[#allocation16_spill]] }
 0x7fa   : > { %s3881_s8 = sld [smem:[#allocation17_spill]]  ;;  %s3885_s25 = smov %s3875_s29 }
 0x7fb   : > { %s3882_s9 = sld [smem:[#allocation18_spill]] }
 0x7fc   : > { %s3883_s19 = sld [smem:[#allocation19_spill]] }
 0x7fe   : > { %s3886_s29 = smov %s3879_s10  ;;  %25 = sbr.rel (!%p23_p8) target bundleno = 14 (0xe), region = 129 }
 0x802   : > { %s3887_s10 = smov %s3883_s19 }
 0x803   :  { %2360 = vsyncpa [#allocation4], 1 }
 0x804   :  { %2362 = vsyncpa [#allocation4 + $0x1], 1 }
 0x805   :  { %2363 = vsyncpa [#allocation7], 1 }
 0x806   :  { %2365 = vsyncpa [#allocation7 + $0x1], 1 }
 0x807   :  { %2366 = vsyncpa [#allocation5], 1 }
 0x808   :  { %2368 = vsyncpa [#allocation5 + $0x1], 1 }

</bundles_post_ra>
